<compile_context>
chip_gen: v7x
topology: tpu7x:2x2x1
jax: 0.10.0
libtpu: 0.0.40
codegen_flags: <defaults>
</compile_context>

<pallas_src>
import jax
import jax.numpy as jnp
from jax.experimental import pallas as pl
from jax.experimental.pallas import tpu as pltpu

# ---- synthetic small-BERT config ----
VOCAB = 50
MAX_POS = 32
HIDDEN = 32
N_LAYERS = 2
N_HEADS = 4
HEAD_DIM = HIDDEN // N_HEADS
FFN = 64
Y_NUM = 6
LN_EPS = 1e-12

B = 2        # batch
S = 8        # sequence length
BS = B * S   # flattened tokens
N_SPANS = 4  # spans per example
BN = B * N_SPANS


def _layernorm(x, gamma, beta, eps=LN_EPS):
    mu = jnp.mean(x, axis=-1, keepdims=True)
    var = jnp.mean(jnp.square(x - mu), axis=-1, keepdims=True)
    return (x - mu) * jax.lax.rsqrt(var + eps) * gamma + beta


# ---------------- single fused Pallas kernel ----------------

def bert_ed_kernel(tok_ref, bias_ref, span_ref, label_ref,
                   word_emb_ref, pos_type_ref, emb_ln_ref,
                   w_attn_ref, b_attn_ref,
                   w1_ref, b1_ref, w2_ref, b2_ref, ln_ref,
                   fc_w_ref, fc_b_ref, loss_ref):
    # tok:      (BS, 1) i32   flattened token ids
    # bias:     (BS, BS) f32  additive attention bias (0 keep, -10000 cross-batch/masked)
    # span:     (BN, 2) i32   flattened (batch-offset folded) start/end token indices
    # label:    (BN, 1) i32   class labels, -1 = ignore
    # word_emb: (VOCAB, H)    word embedding table
    # pos_type: (S, H)        position embeddings (first S rows) + token-type-0 row
    # w_attn:   (L, H, 4H) = [Wq|Wk|Wv|Wo] ; b_attn: (L, 1, 4H)
    # w1/b1:    (L, H, FFN)/(L, 1, FFN) ; w2/b2: (L, FFN, H)/(L, 1, H)
    # ln:       (L, 4, H) rows = [ln1_g, ln1_b, ln2_g, ln2_b]
    # fc_w:     (H, Y) ; fc_b: (1, Y) ; loss: (1, 1)
    scale = 1.0 / float(HEAD_DIM) ** 0.5

    # Word-embedding lookup as a one-hot MXU gather: (BS,VOCAB)@(VOCAB,H).
    tok = tok_ref[...]                                            # (BS, 1) i32
    vocab_ids = jax.lax.broadcasted_iota(jnp.int32, (BS, VOCAB), 1)
    tok_oh = (vocab_ids == tok).astype(jnp.float32)               # (BS, VOCAB)
    x = jnp.dot(tok_oh, word_emb_ref[...], preferred_element_type=jnp.float32)
    # position + token-type embeddings, replicated once per batch (hoisted).
    x = x + jnp.concatenate([pos_type_ref[...]] * B, axis=0)      # (BS, H)

    emb_ln = emb_ln_ref[...]                                      # (2, H)
    x = _layernorm(x, emb_ln[0:1, :], emb_ln[1:2, :])             # (BS, H)

    # Hoisted once: attention bias replicated for all heads (stacked along sublanes).
    attn_bias = bias_ref[...]                                     # (BS, BS)
    bias_tiled = jnp.concatenate([attn_bias] * N_HEADS, axis=0)   # (NH*BS, BS)

    for l in range(N_LAYERS):
        w_a = w_attn_ref[l]                                       # (H, 4H)
        b_a = b_attn_ref[l]                                       # (1, 4H)

        # Fused QKV projection for all B*S tokens: one (16,32)@(32,96) matmul.
        qkv = jnp.dot(x, w_a[:, :3 * HIDDEN],
                      preferred_element_type=jnp.float32) + b_a[:, :3 * HIDDEN]

        # Per-head scores over the flattened token axis; cross-batch / masked keys are
        # removed exactly by the -10000 bias (exp underflows to 0 in f32).
        score_blocks = []
        for h in range(N_HEADS):
            lo = h * HEAD_DIM
            qh = qkv[:, lo:lo + HEAD_DIM]                         # (BS, hd)
            kh = qkv[:, HIDDEN + lo:HIDDEN + lo + HEAD_DIM]       # (BS, hd)
            score_blocks.append(
                jnp.einsum('qd,kd->qk', qh, kh,
                           preferred_element_type=jnp.float32))   # (BS, BS)
        scores = jnp.concatenate(score_blocks, axis=0) * scale + bias_tiled  # (NH*BS, BS)

        # One softmax for all heads; divide on the EUP via approximate reciprocal.
        m = jnp.max(scores, axis=-1, keepdims=True)
        e = jnp.exp(scores - m)
        probs = e * pl.reciprocal(jnp.sum(e, axis=-1, keepdims=True), approx=True)

        # Per-head context, then ONE output projection over concatenated heads.
        ctx_blocks = []
        for h in range(N_HEADS):
            lo = h * HEAD_DIM
            ph = probs[h * BS:(h + 1) * BS, :]                    # (BS, BS)
            vh = qkv[:, 2 * HIDDEN + lo:2 * HIDDEN + lo + HEAD_DIM]
            ctx_blocks.append(jnp.dot(ph, vh, preferred_element_type=jnp.float32))
        ctx = jnp.concatenate(ctx_blocks, axis=1)                 # (BS, H)
        attn = jnp.dot(ctx, w_a[:, 3 * HIDDEN:],
                       preferred_element_type=jnp.float32) + b_a[:, 3 * HIDDEN:]

        lnp = ln_ref[l]                                           # (4, H)
        h1 = _layernorm(x + attn, lnp[0:1, :], lnp[1:2, :])

        ffn = jnp.dot(h1, w1_ref[l], preferred_element_type=jnp.float32) + b1_ref[l]
        # TODO(synk): HF BertIntermediate uses erf-based GELU; tanh approximation used here.
        ffn = jax.nn.gelu(ffn, approximate=True)
        ffn = jnp.dot(ffn, w2_ref[l], preferred_element_type=jnp.float32) + b2_ref[l]
        x = _layernorm(h1 + ffn, lnp[2:3, :], lnp[3:4, :])

    # EndpointSpanExtractor (combination='x+y'): one-hot gather over flattened tokens
    # as a single (BN, BS)@(BS, H) matmul (start one-hot + end one-hot in one pass).
    sp = span_ref[...]                                            # (BN, 2) i32
    starts = sp[:, 0:1]
    ends = sp[:, 1:2]
    col_ids = jax.lax.broadcasted_iota(jnp.int32, (BN, BS), 1)
    gather = ((col_ids == starts).astype(jnp.float32)
              + (col_ids == ends).astype(jnp.float32))            # (BN, BS)
    span_emb = jnp.dot(gather, x, preferred_element_type=jnp.float32)          # (BN, H)
    logits = jnp.dot(span_emb, fc_w_ref[...],
                     preferred_element_type=jnp.float32) + fc_b_ref[...]       # (BN, Y)

    # CrossEntropyLoss(ignore_index=-1), mean over non-ignored targets.
    lbl = label_ref[...]                                          # (BN, 1) i32
    valid = (lbl != -1).astype(jnp.float32)
    lbl_safe = jnp.where(lbl == -1, 0, lbl)
    cls_ids = jax.lax.broadcasted_iota(jnp.int32, (BN, Y_NUM), 1)
    oh_y = (cls_ids == lbl_safe).astype(jnp.float32)
    mm = jnp.max(logits, axis=-1, keepdims=True)
    lse = mm + jnp.log(jnp.sum(jnp.exp(logits - mm), axis=-1, keepdims=True))  # (BN, 1)
    picked = jnp.sum(oh_y * logits, axis=-1, keepdims=True)                    # (BN, 1)
    total = jnp.sum((lse - picked) * valid, axis=0, keepdims=True)             # (1, 1)
    count = jnp.sum(valid, axis=0, keepdims=True)                              # (1, 1)
    # guard: if every label is -1, return 0 instead of NaN.
    loss_ref[...] = total / jnp.maximum(count, 1.0)


# ---------------- wrapper (glue: reshapes / casts only) ----------------

_VMEM = pl.BlockSpec(memory_space=pltpu.MemorySpace.VMEM)


def bert_ed_forward(params, data_x, bert_mask, data_span, data_y):
    # token ids flattened to (B*S, 1); embedding gather happens inside the kernel.
    tok = data_x.astype(jnp.int32).reshape(BS, 1)

    # position + token-type-0 embeddings pre-summed once (parameter-only preprocessing).
    pos_type = (params['pos_emb'][:S] + params['type_emb'][0][None, :]).astype(jnp.float32)

    # additive attention bias over flattened tokens: 0 = attend, -10000 = masked key
    # or cross-batch pair (HF BERT style; exact after exp underflow). Tiny (16x16).
    key_keep = bert_mask.astype(jnp.float32).reshape(1, BS)      # (1, BS)
    bids = jnp.arange(BS, dtype=jnp.int32) // S
    same_batch = (bids[:, None] == bids[None, :]).astype(jnp.float32)
    attn_bias = (same_batch * key_keep - 1.0) * 10000.0          # (BS, BS)

    # span indices flattened into the (B*S) token axis
    batch_off = (jnp.arange(B, dtype=jnp.int32) * S)[:, None, None]
    span_flat = (data_span.astype(jnp.int32) + batch_off).reshape(BN, 2)
    labels = data_y.reshape(BN, 1).astype(jnp.int32)

    loss = pl.pallas_call(
        bert_ed_kernel,
        out_shape=jax.ShapeDtypeStruct((1, 1), jnp.float32),
        in_specs=[_VMEM] * 16,
        out_specs=_VMEM,
    )(tok, attn_bias, span_flat, labels,
      params['word_emb'], pos_type, params['emb_ln'],
      params['w_attn'], params['b_attn'],
      params['w_ffn1'], params['b_ffn1'], params['w_ffn2'], params['b_ffn2'],
      params['ln'], params['fc_w'], params['fc_b'])
    return loss[0, 0]


def init_params(key):
    ks = jax.random.split(key, 4 + N_LAYERS)

    def nrm(k, shape):
        return 0.02 * jax.random.normal(k, shape, jnp.float32)

    w_attn, b_attn, w1s, b1s, w2s, b2s, lns = [], [], [], [], [], [], []
    for i in range(N_LAYERS):
        lk = jax.random.split(ks[4 + i], 6)
        wq, wk, wv, wo = (nrm(lk[j], (HIDDEN, HIDDEN)) for j in range(4))
        w_attn.append(jnp.concatenate([wq, wk, wv, wo], axis=1))          # (H, 4H)
        b_attn.append(jnp.zeros((1, 4 * HIDDEN), jnp.float32))
        w1s.append(nrm(lk[4], (HIDDEN, FFN)))
        b1s.append(jnp.zeros((1, FFN), jnp.float32))
        w2s.append(nrm(lk[5], (FFN, HIDDEN)))
        b2s.append(jnp.zeros((1, HIDDEN), jnp.float32))
        lns.append(jnp.stack([jnp.ones((HIDDEN,), jnp.float32),
                              jnp.zeros((HIDDEN,), jnp.float32),
                              jnp.ones((HIDDEN,), jnp.float32),
                              jnp.zeros((HIDDEN,), jnp.float32)], axis=0))  # (4, H)

    params = {
        'word_emb': nrm(ks[0], (VOCAB, HIDDEN)),
        'pos_emb': nrm(ks[1], (MAX_POS, HIDDEN)),
        'type_emb': nrm(ks[2], (2, HIDDEN)),
        'emb_ln': jnp.stack([jnp.ones((HIDDEN,), jnp.float32),
                             jnp.zeros((HIDDEN,), jnp.float32)], axis=0),   # (2, H)
        'w_attn': jnp.stack(w_attn, axis=0),     # (L, H, 4H)
        'b_attn': jnp.stack(b_attn, axis=0),     # (L, 1, 4H)
        'w_ffn1': jnp.stack(w1s, axis=0),        # (L, H, FFN)
        'b_ffn1': jnp.stack(b1s, axis=0),        # (L, 1, FFN)
        'w_ffn2': jnp.stack(w2s, axis=0),        # (L, FFN, H)
        'b_ffn2': jnp.stack(b2s, axis=0),        # (L, 1, H)
        'ln': jnp.stack(lns, axis=0),            # (L, 4, H)
        'fc_w': nrm(ks[3], (HIDDEN, Y_NUM)),
        'fc_b': jnp.zeros((1, Y_NUM), jnp.float32),
    }
    return params


if __name__ == "__main__":
    key = jax.random.PRNGKey(0)
    pk, dk = jax.random.split(key)
    params = init_params(pk)

    k1, k2, k3, k4 = jax.random.split(dk, 4)
    data_x = jax.random.randint(k1, (B, S), 0, VOCAB, dtype=jnp.int32)
    bert_mask = jnp.array([[1] * S, [1] * (S - 2) + [0] * 2], dtype=jnp.int32)  # (B, S)
    starts = jax.random.randint(k2, (B, N_SPANS, 1), 0, S, dtype=jnp.int32)
    lengths = jax.random.randint(k3, (B, N_SPANS, 1), 0, 3, dtype=jnp.int32)
    ends = jnp.minimum(starts + lengths, S - 1)
    data_span = jnp.concatenate([starts, ends], axis=-1)                         # (B, N, 2)
    data_y = jax.random.randint(k4, (B, N_SPANS), 0, Y_NUM, dtype=jnp.int32)
    data_y = data_y.at[1, -1].set(-1)  # exercise ignore_index=-1

    loss = bert_ed_forward(params, data_x, bert_mask, data_span, data_y)
    jax.block_until_ready(loss)
    print("KERNEL_OK")
</pallas_src>

<mosaic_0001>
module attributes {stable_mosaic.version = 11 : i64} {
  func.func @bert_ed_kernel(%arg0: memref<16x1xi32, #tpu.memory_space<vmem>>, %arg1: memref<16x16xf32, #tpu.memory_space<vmem>>, %arg2: memref<8x2xi32, #tpu.memory_space<vmem>>, %arg3: memref<8x1xi32, #tpu.memory_space<vmem>>, %arg4: memref<50x32xf32, #tpu.memory_space<vmem>>, %arg5: memref<8x32xf32, #tpu.memory_space<vmem>>, %arg6: memref<2x32xf32, #tpu.memory_space<vmem>>, %arg7: memref<2x32x128xf32, #tpu.memory_space<vmem>>, %arg8: memref<2x1x128xf32, #tpu.memory_space<vmem>>, %arg9: memref<2x32x64xf32, #tpu.memory_space<vmem>>, %arg10: memref<2x1x64xf32, #tpu.memory_space<vmem>>, %arg11: memref<2x64x32xf32, #tpu.memory_space<vmem>>, %arg12: memref<2x1x32xf32, #tpu.memory_space<vmem>>, %arg13: memref<2x4x32xf32, #tpu.memory_space<vmem>>, %arg14: memref<32x6xf32, #tpu.memory_space<vmem>>, %arg15: memref<1x6xf32, #tpu.memory_space<vmem>>, %arg16: memref<1x1xf32, #tpu.memory_space<vmem>>) attributes {dimension_semantics = [], scalar_prefetch = 0 : i64, scratch_operands = 0 : i64, tpu.core_type = #tpu.core_type<tc>} {
    %c0 = arith.constant 0 : index
    %c0_0 = arith.constant 0 : index
    %0 = vector.load %arg0[%c0, %c0_0] : memref<16x1xi32, #tpu.memory_space<vmem>>, vector<16x1xi32>
    %1 = tpu.iota {dimensions = array<i32: 1>} : vector<16x50xi32>
    %2 = vector.broadcast %0 : vector<16x1xi32> to vector<16x50xi32>
    %3 = arith.cmpi eq, %1, %2 : vector<16x50xi32>
    %4 = arith.extui %3 : vector<16x50xi1> to vector<16x50xi32>
    %5 = arith.sitofp %4 : vector<16x50xi32> to vector<16x50xf32>
    %c0_1 = arith.constant 0 : index
    %c0_2 = arith.constant 0 : index
    %6 = vector.load %arg4[%c0_1, %c0_2] : memref<50x32xf32, #tpu.memory_space<vmem>>, vector<50x32xf32>
    %cst = arith.constant dense<0.000000e+00> : vector<16x32xf32>
    %7 = tpu.matmul %5, %6, %cst {dimension_numbers = #tpu.dot_dimension_numbers<[1], [0], [0], [1], [0, 0, 1, 1], [], []>} : vector<16x50xf32>, vector<50x32xf32>, vector<16x32xf32> -> vector<16x32xf32>
    %c0_3 = arith.constant 0 : index
    %c0_4 = arith.constant 0 : index
    %8 = vector.load %arg5[%c0_3, %c0_4] : memref<8x32xf32, #tpu.memory_space<vmem>>, vector<8x32xf32>
    %9 = tpu.concatenate %8, %8 in 0 : vector<8x32xf32>, vector<8x32xf32> -> vector<16x32xf32>
    %10 = arith.addf %7, %9 : vector<16x32xf32>
    %c0_5 = arith.constant 0 : index
    %c0_6 = arith.constant 0 : index
    %11 = vector.load %arg6[%c0_5, %c0_6] : memref<2x32xf32, #tpu.memory_space<vmem>>, vector<2x32xf32>
    %12 = vector.extract_strided_slice %11 {offsets = [0, 0], sizes = [1, 32], strides = [1, 1]} : vector<2x32xf32> to vector<1x32xf32>
    %13 = vector.extract_strided_slice %11 {offsets = [1, 0], sizes = [1, 32], strides = [1, 1]} : vector<2x32xf32> to vector<1x32xf32>
    %cst_7 = arith.constant dense<0.000000e+00> : vector<16xf32>
    %14 = vector.multi_reduction <add>, %10, %cst_7 [1] : vector<16x32xf32> to vector<16xf32>
    %15 = vector.shape_cast %14 : vector<16xf32> to vector<16x1xf32>
    %cst_8 = arith.constant 3.200000e+01 : f32
    %16 = vector.broadcast %cst_8 : f32 to vector<16x1xf32>
    %17 = arith.divf %15, %16 : vector<16x1xf32>
    %18 = vector.broadcast %17 : vector<16x1xf32> to vector<16x32xf32>
    %19 = arith.subf %10, %18 : vector<16x32xf32>
    %20 = arith.mulf %19, %19 : vector<16x32xf32>
    %cst_9 = arith.constant dense<0.000000e+00> : vector<16xf32>
    %21 = vector.multi_reduction <add>, %20, %cst_9 [1] : vector<16x32xf32> to vector<16xf32>
    %22 = vector.shape_cast %21 : vector<16xf32> to vector<16x1xf32>
    %cst_10 = arith.constant 3.200000e+01 : f32
    %23 = vector.broadcast %cst_10 : f32 to vector<16x1xf32>
    %24 = arith.divf %22, %23 : vector<16x1xf32>
    %25 = vector.broadcast %17 : vector<16x1xf32> to vector<16x32xf32>
    %26 = arith.subf %10, %25 : vector<16x32xf32>
    %cst_11 = arith.constant 9.99999996E-13 : f32
    %27 = vector.broadcast %cst_11 : f32 to vector<16x1xf32>
    %28 = arith.addf %24, %27 : vector<16x1xf32>
    %29 = math.rsqrt %28 : vector<16x1xf32>
    %30 = vector.broadcast %29 : vector<16x1xf32> to vector<16x32xf32>
    %31 = arith.mulf %26, %30 : vector<16x32xf32>
    %32 = vector.broadcast %12 : vector<1x32xf32> to vector<16x32xf32>
    %33 = arith.mulf %31, %32 : vector<16x32xf32>
    %34 = vector.broadcast %13 : vector<1x32xf32> to vector<16x32xf32>
    %35 = arith.addf %33, %34 : vector<16x32xf32>
    %c0_12 = arith.constant 0 : index
    %c0_13 = arith.constant 0 : index
    %36 = vector.load %arg1[%c0_12, %c0_13] : memref<16x16xf32, #tpu.memory_space<vmem>>, vector<16x16xf32>
    %37 = tpu.concatenate %36, %36, %36, %36 in 0 : vector<16x16xf32>, vector<16x16xf32>, vector<16x16xf32>, vector<16x16xf32> -> vector<64x16xf32>
    %c0_14 = arith.constant 0 : index
    %c0_15 = arith.constant 0 : index
    %c0_16 = arith.constant 0 : index
    %38 = vector.load %arg7[%c0_14, %c0_15, %c0_16] : memref<2x32x128xf32, #tpu.memory_space<vmem>>, vector<1x32x128xf32>
    %39 = vector.shape_cast %38 : vector<1x32x128xf32> to vector<32x128xf32>
    %c0_17 = arith.constant 0 : index
    %c0_18 = arith.constant 0 : index
    %c0_19 = arith.constant 0 : index
    %40 = vector.load %arg8[%c0_17, %c0_18, %c0_19] : memref<2x1x128xf32, #tpu.memory_space<vmem>>, vector<1x1x128xf32>
    %41 = vector.shape_cast %40 : vector<1x1x128xf32> to vector<1x128xf32>
    %42 = vector.extract_strided_slice %39 {offsets = [0, 0], sizes = [32, 96], strides = [1, 1]} : vector<32x128xf32> to vector<32x96xf32>
    %cst_20 = arith.constant dense<0.000000e+00> : vector<16x96xf32>
    %43 = tpu.matmul %35, %42, %cst_20 {dimension_numbers = #tpu.dot_dimension_numbers<[1], [0], [0], [1], [0, 0, 1, 1], [], []>} : vector<16x32xf32>, vector<32x96xf32>, vector<16x96xf32> -> vector<16x96xf32>
    %44 = vector.extract_strided_slice %41 {offsets = [0, 0], sizes = [1, 96], strides = [1, 1]} : vector<1x128xf32> to vector<1x96xf32>
    %45 = vector.broadcast %44 : vector<1x96xf32> to vector<16x96xf32>
    %46 = arith.addf %43, %45 : vector<16x96xf32>
    %47 = vector.extract_strided_slice %46 {offsets = [0, 0], sizes = [16, 8], strides = [1, 1]} : vector<16x96xf32> to vector<16x8xf32>
    %48 = vector.extract_strided_slice %46 {offsets = [0, 32], sizes = [16, 8], strides = [1, 1]} : vector<16x96xf32> to vector<16x8xf32>
    "tpu.trace_start"() <{level = 10 : i32, message = "qd,kd->qk"}> : () -> ()
    %cst_21 = arith.constant dense<0.000000e+00> : vector<16x16xf32>
    %49 = tpu.matmul %47, %48, %cst_21 {dimension_numbers = #tpu.dot_dimension_numbers<[1], [1], [0], [0], [0, 0, 1, 0], [], []>} : vector<16x8xf32>, vector<16x8xf32>, vector<16x16xf32> -> vector<16x16xf32>
    "tpu.trace_stop"() : () -> ()
    %50 = vector.extract_strided_slice %46 {offsets = [0, 8], sizes = [16, 8], strides = [1, 1]} : vector<16x96xf32> to vector<16x8xf32>
    %51 = vector.extract_strided_slice %46 {offsets = [0, 40], sizes = [16, 8], strides = [1, 1]} : vector<16x96xf32> to vector<16x8xf32>
    "tpu.trace_start"() <{level = 10 : i32, message = "qd,kd->qk"}> : () -> ()
    %cst_22 = arith.constant dense<0.000000e+00> : vector<16x16xf32>
    %52 = tpu.matmul %50, %51, %cst_22 {dimension_numbers = #tpu.dot_dimension_numbers<[1], [1], [0], [0], [0, 0, 1, 0], [], []>} : vector<16x8xf32>, vector<16x8xf32>, vector<16x16xf32> -> vector<16x16xf32>
    "tpu.trace_stop"() : () -> ()
    %53 = vector.extract_strided_slice %46 {offsets = [0, 16], sizes = [16, 8], strides = [1, 1]} : vector<16x96xf32> to vector<16x8xf32>
    %54 = vector.extract_strided_slice %46 {offsets = [0, 48], sizes = [16, 8], strides = [1, 1]} : vector<16x96xf32> to vector<16x8xf32>
    "tpu.trace_start"() <{level = 10 : i32, message = "qd,kd->qk"}> : () -> ()
    %cst_23 = arith.constant dense<0.000000e+00> : vector<16x16xf32>
    %55 = tpu.matmul %53, %54, %cst_23 {dimension_numbers = #tpu.dot_dimension_numbers<[1], [1], [0], [0], [0, 0, 1, 0], [], []>} : vector<16x8xf32>, vector<16x8xf32>, vector<16x16xf32> -> vector<16x16xf32>
    "tpu.trace_stop"() : () -> ()
    %56 = vector.extract_strided_slice %46 {offsets = [0, 24], sizes = [16, 8], strides = [1, 1]} : vector<16x96xf32> to vector<16x8xf32>
    %57 = vector.extract_strided_slice %46 {offsets = [0, 56], sizes = [16, 8], strides = [1, 1]} : vector<16x96xf32> to vector<16x8xf32>
    "tpu.trace_start"() <{level = 10 : i32, message = "qd,kd->qk"}> : () -> ()
    %cst_24 = arith.constant dense<0.000000e+00> : vector<16x16xf32>
    %58 = tpu.matmul %56, %57, %cst_24 {dimension_numbers = #tpu.dot_dimension_numbers<[1], [1], [0], [0], [0, 0, 1, 0], [], []>} : vector<16x8xf32>, vector<16x8xf32>, vector<16x16xf32> -> vector<16x16xf32>
    "tpu.trace_stop"() : () -> ()
    %59 = tpu.concatenate %49, %52, %55, %58 in 0 : vector<16x16xf32>, vector<16x16xf32>, vector<16x16xf32>, vector<16x16xf32> -> vector<64x16xf32>
    %cst_25 = arith.constant 0.353553385 : f32
    %60 = vector.broadcast %cst_25 : f32 to vector<64x16xf32>
    %61 = arith.mulf %59, %60 : vector<64x16xf32>
    %62 = arith.addf %61, %37 : vector<64x16xf32>
    %cst_26 = arith.constant dense<0xFF800000> : vector<64xf32>
    %63 = vector.multi_reduction <maximumf>, %62, %cst_26 [1] : vector<64x16xf32> to vector<64xf32>
    %64 = vector.shape_cast %63 : vector<64xf32> to vector<64x1xf32>
    %65 = vector.broadcast %64 : vector<64x1xf32> to vector<64x16xf32>
    %66 = arith.subf %62, %65 : vector<64x16xf32>
    %67 = math.exp %66 : vector<64x16xf32>
    %cst_27 = arith.constant dense<0.000000e+00> : vector<64xf32>
    %68 = vector.multi_reduction <add>, %67, %cst_27 [1] : vector<64x16xf32> to vector<64xf32>
    %69 = vector.shape_cast %68 : vector<64xf32> to vector<64x1xf32>
    %70 = tpu.reciprocal %69 {approx = true} : vector<64x1xf32> -> vector<64x1xf32>
    %71 = vector.broadcast %70 : vector<64x1xf32> to vector<64x16xf32>
    %72 = arith.mulf %67, %71 : vector<64x16xf32>
    %73 = vector.extract_strided_slice %72 {offsets = [0, 0], sizes = [16, 16], strides = [1, 1]} : vector<64x16xf32> to vector<16x16xf32>
    %74 = vector.extract_strided_slice %46 {offsets = [0, 64], sizes = [16, 8], strides = [1, 1]} : vector<16x96xf32> to vector<16x8xf32>
    %cst_28 = arith.constant dense<0.000000e+00> : vector<16x8xf32>
    %75 = tpu.matmul %73, %74, %cst_28 {dimension_numbers = #tpu.dot_dimension_numbers<[1], [0], [0], [1], [0, 0, 1, 1], [], []>} : vector<16x16xf32>, vector<16x8xf32>, vector<16x8xf32> -> vector<16x8xf32>
    %76 = vector.extract_strided_slice %72 {offsets = [16, 0], sizes = [16, 16], strides = [1, 1]} : vector<64x16xf32> to vector<16x16xf32>
    %77 = vector.extract_strided_slice %46 {offsets = [0, 72], sizes = [16, 8], strides = [1, 1]} : vector<16x96xf32> to vector<16x8xf32>
    %cst_29 = arith.constant dense<0.000000e+00> : vector<16x8xf32>
    %78 = tpu.matmul %76, %77, %cst_29 {dimension_numbers = #tpu.dot_dimension_numbers<[1], [0], [0], [1], [0, 0, 1, 1], [], []>} : vector<16x16xf32>, vector<16x8xf32>, vector<16x8xf32> -> vector<16x8xf32>
    %79 = vector.extract_strided_slice %72 {offsets = [32, 0], sizes = [16, 16], strides = [1, 1]} : vector<64x16xf32> to vector<16x16xf32>
    %80 = vector.extract_strided_slice %46 {offsets = [0, 80], sizes = [16, 8], strides = [1, 1]} : vector<16x96xf32> to vector<16x8xf32>
    %cst_30 = arith.constant dense<0.000000e+00> : vector<16x8xf32>
    %81 = tpu.matmul %79, %80, %cst_30 {dimension_numbers = #tpu.dot_dimension_numbers<[1], [0], [0], [1], [0, 0, 1, 1], [], []>} : vector<16x16xf32>, vector<16x8xf32>, vector<16x8xf32> -> vector<16x8xf32>
    %82 = vector.extract_strided_slice %72 {offsets = [48, 0], sizes = [16, 16], strides = [1, 1]} : vector<64x16xf32> to vector<16x16xf32>
    %83 = vector.extract_strided_slice %46 {offsets = [0, 88], sizes = [16, 8], strides = [1, 1]} : vector<16x96xf32> to vector<16x8xf32>
    %cst_31 = arith.constant dense<0.000000e+00> : vector<16x8xf32>
    %84 = tpu.matmul %82, %83, %cst_31 {dimension_numbers = #tpu.dot_dimension_numbers<[1], [0], [0], [1], [0, 0, 1, 1], [], []>} : vector<16x16xf32>, vector<16x8xf32>, vector<16x8xf32> -> vector<16x8xf32>
    %85 = tpu.concatenate %75, %78, %81, %84 in 1 : vector<16x8xf32>, vector<16x8xf32>, vector<16x8xf32>, vector<16x8xf32> -> vector<16x32xf32>
    %86 = vector.extract_strided_slice %39 {offsets = [0, 96], sizes = [32, 32], strides = [1, 1]} : vector<32x128xf32> to vector<32x32xf32>
    %cst_32 = arith.constant dense<0.000000e+00> : vector<16x32xf32>
    %87 = tpu.matmul %85, %86, %cst_32 {dimension_numbers = #tpu.dot_dimension_numbers<[1], [0], [0], [1], [0, 0, 1, 1], [], []>} : vector<16x32xf32>, vector<32x32xf32>, vector<16x32xf32> -> vector<16x32xf32>
    %88 = vector.extract_strided_slice %41 {offsets = [0, 96], sizes = [1, 32], strides = [1, 1]} : vector<1x128xf32> to vector<1x32xf32>
    %89 = vector.broadcast %88 : vector<1x32xf32> to vector<16x32xf32>
    %90 = arith.addf %87, %89 : vector<16x32xf32>
    %c0_33 = arith.constant 0 : index
    %c0_34 = arith.constant 0 : index
    %c0_35 = arith.constant 0 : index
    %91 = vector.load %arg13[%c0_33, %c0_34, %c0_35] : memref<2x4x32xf32, #tpu.memory_space<vmem>>, vector<1x4x32xf32>
    %92 = vector.shape_cast %91 : vector<1x4x32xf32> to vector<4x32xf32>
    %93 = arith.addf %35, %90 : vector<16x32xf32>
    %94 = vector.extract_strided_slice %92 {offsets = [0, 0], sizes = [1, 32], strides = [1, 1]} : vector<4x32xf32> to vector<1x32xf32>
    %95 = vector.extract_strided_slice %92 {offsets = [1, 0], sizes = [1, 32], strides = [1, 1]} : vector<4x32xf32> to vector<1x32xf32>
    %cst_36 = arith.constant dense<0.000000e+00> : vector<16xf32>
    %96 = vector.multi_reduction <add>, %93, %cst_36 [1] : vector<16x32xf32> to vector<16xf32>
    %97 = vector.shape_cast %96 : vector<16xf32> to vector<16x1xf32>
    %cst_37 = arith.constant 3.200000e+01 : f32
    %98 = vector.broadcast %cst_37 : f32 to vector<16x1xf32>
    %99 = arith.divf %97, %98 : vector<16x1xf32>
    %100 = vector.broadcast %99 : vector<16x1xf32> to vector<16x32xf32>
    %101 = arith.subf %93, %100 : vector<16x32xf32>
    %102 = arith.mulf %101, %101 : vector<16x32xf32>
    %cst_38 = arith.constant dense<0.000000e+00> : vector<16xf32>
    %103 = vector.multi_reduction <add>, %102, %cst_38 [1] : vector<16x32xf32> to vector<16xf32>
    %104 = vector.shape_cast %103 : vector<16xf32> to vector<16x1xf32>
    %cst_39 = arith.constant 3.200000e+01 : f32
    %105 = vector.broadcast %cst_39 : f32 to vector<16x1xf32>
    %106 = arith.divf %104, %105 : vector<16x1xf32>
    %107 = vector.broadcast %99 : vector<16x1xf32> to vector<16x32xf32>
    %108 = arith.subf %93, %107 : vector<16x32xf32>
    %cst_40 = arith.constant 9.99999996E-13 : f32
    %109 = vector.broadcast %cst_40 : f32 to vector<16x1xf32>
    %110 = arith.addf %106, %109 : vector<16x1xf32>
    %111 = math.rsqrt %110 : vector<16x1xf32>
    %112 = vector.broadcast %111 : vector<16x1xf32> to vector<16x32xf32>
    %113 = arith.mulf %108, %112 : vector<16x32xf32>
    %114 = vector.broadcast %94 : vector<1x32xf32> to vector<16x32xf32>
    %115 = arith.mulf %113, %114 : vector<16x32xf32>
    %116 = vector.broadcast %95 : vector<1x32xf32> to vector<16x32xf32>
    %117 = arith.addf %115, %116 : vector<16x32xf32>
    %c0_41 = arith.constant 0 : index
    %c0_42 = arith.constant 0 : index
    %c0_43 = arith.constant 0 : index
    %118 = vector.load %arg9[%c0_41, %c0_42, %c0_43] : memref<2x32x64xf32, #tpu.memory_space<vmem>>, vector<1x32x64xf32>
    %119 = vector.shape_cast %118 : vector<1x32x64xf32> to vector<32x64xf32>
    %cst_44 = arith.constant dense<0.000000e+00> : vector<16x64xf32>
    %120 = tpu.matmul %117, %119, %cst_44 {dimension_numbers = #tpu.dot_dimension_numbers<[1], [0], [0], [1], [0, 0, 1, 1], [], []>} : vector<16x32xf32>, vector<32x64xf32>, vector<16x64xf32> -> vector<16x64xf32>
    %c0_45 = arith.constant 0 : index
    %c0_46 = arith.constant 0 : index
    %c0_47 = arith.constant 0 : index
    %121 = vector.load %arg10[%c0_45, %c0_46, %c0_47] : memref<2x1x64xf32, #tpu.memory_space<vmem>>, vector<1x1x64xf32>
    %122 = vector.shape_cast %121 : vector<1x1x64xf32> to vector<1x64xf32>
    %123 = vector.broadcast %122 : vector<1x64xf32> to vector<16x64xf32>
    %124 = arith.addf %120, %123 : vector<16x64xf32>
    %125 = arith.mulf %124, %124 : vector<16x64xf32>
    %126 = arith.mulf %124, %125 : vector<16x64xf32>
    %cst_48 = arith.constant 4.471500e-02 : f32
    %127 = vector.broadcast %cst_48 : f32 to vector<16x64xf32>
    %128 = arith.mulf %127, %126 : vector<16x64xf32>
    %129 = arith.addf %124, %128 : vector<16x64xf32>
    %cst_49 = arith.constant 0.797884583 : f32
    %130 = vector.broadcast %cst_49 : f32 to vector<16x64xf32>
    %131 = arith.mulf %130, %129 : vector<16x64xf32>
    %132 = math.tanh %131 : vector<16x64xf32>
    %cst_50 = arith.constant 1.000000e+00 : f32
    %133 = vector.broadcast %cst_50 : f32 to vector<16x64xf32>
    %134 = arith.addf %133, %132 : vector<16x64xf32>
    %cst_51 = arith.constant 5.000000e-01 : f32
    %135 = vector.broadcast %cst_51 : f32 to vector<16x64xf32>
    %136 = arith.mulf %135, %134 : vector<16x64xf32>
    %137 = arith.mulf %124, %136 : vector<16x64xf32>
    %c0_52 = arith.constant 0 : index
    %c0_53 = arith.constant 0 : index
    %c0_54 = arith.constant 0 : index
    %138 = vector.load %arg11[%c0_52, %c0_53, %c0_54] : memref<2x64x32xf32, #tpu.memory_space<vmem>>, vector<1x64x32xf32>
    %139 = vector.shape_cast %138 : vector<1x64x32xf32> to vector<64x32xf32>
    %cst_55 = arith.constant dense<0.000000e+00> : vector<16x32xf32>
    %140 = tpu.matmul %137, %139, %cst_55 {dimension_numbers = #tpu.dot_dimension_numbers<[1], [0], [0], [1], [0, 0, 1, 1], [], []>} : vector<16x64xf32>, vector<64x32xf32>, vector<16x32xf32> -> vector<16x32xf32>
    %c0_56 = arith.constant 0 : index
    %c0_57 = arith.constant 0 : index
    %c0_58 = arith.constant 0 : index
    %141 = vector.load %arg12[%c0_56, %c0_57, %c0_58] : memref<2x1x32xf32, #tpu.memory_space<vmem>>, vector<1x1x32xf32>
    %142 = vector.shape_cast %141 : vector<1x1x32xf32> to vector<1x32xf32>
    %143 = vector.broadcast %142 : vector<1x32xf32> to vector<16x32xf32>
    %144 = arith.addf %140, %143 : vector<16x32xf32>
    %145 = arith.addf %117, %144 : vector<16x32xf32>
    %146 = vector.extract_strided_slice %92 {offsets = [2, 0], sizes = [1, 32], strides = [1, 1]} : vector<4x32xf32> to vector<1x32xf32>
    %147 = vector.extract_strided_slice %92 {offsets = [3, 0], sizes = [1, 32], strides = [1, 1]} : vector<4x32xf32> to vector<1x32xf32>
    %cst_59 = arith.constant dense<0.000000e+00> : vector<16xf32>
    %148 = vector.multi_reduction <add>, %145, %cst_59 [1] : vector<16x32xf32> to vector<16xf32>
    %149 = vector.shape_cast %148 : vector<16xf32> to vector<16x1xf32>
    %cst_60 = arith.constant 3.200000e+01 : f32
    %150 = vector.broadcast %cst_60 : f32 to vector<16x1xf32>
    %151 = arith.divf %149, %150 : vector<16x1xf32>
    %152 = vector.broadcast %151 : vector<16x1xf32> to vector<16x32xf32>
    %153 = arith.subf %145, %152 : vector<16x32xf32>
    %154 = arith.mulf %153, %153 : vector<16x32xf32>
    %cst_61 = arith.constant dense<0.000000e+00> : vector<16xf32>
    %155 = vector.multi_reduction <add>, %154, %cst_61 [1] : vector<16x32xf32> to vector<16xf32>
    %156 = vector.shape_cast %155 : vector<16xf32> to vector<16x1xf32>
    %cst_62 = arith.constant 3.200000e+01 : f32
    %157 = vector.broadcast %cst_62 : f32 to vector<16x1xf32>
    %158 = arith.divf %156, %157 : vector<16x1xf32>
    %159 = vector.broadcast %151 : vector<16x1xf32> to vector<16x32xf32>
    %160 = arith.subf %145, %159 : vector<16x32xf32>
    %cst_63 = arith.constant 9.99999996E-13 : f32
    %161 = vector.broadcast %cst_63 : f32 to vector<16x1xf32>
    %162 = arith.addf %158, %161 : vector<16x1xf32>
    %163 = math.rsqrt %162 : vector<16x1xf32>
    %164 = vector.broadcast %163 : vector<16x1xf32> to vector<16x32xf32>
    %165 = arith.mulf %160, %164 : vector<16x32xf32>
    %166 = vector.broadcast %146 : vector<1x32xf32> to vector<16x32xf32>
    %167 = arith.mulf %165, %166 : vector<16x32xf32>
    %168 = vector.broadcast %147 : vector<1x32xf32> to vector<16x32xf32>
    %169 = arith.addf %167, %168 : vector<16x32xf32>
    %c1 = arith.constant 1 : index
    %c0_64 = arith.constant 0 : index
    %c0_65 = arith.constant 0 : index
    %170 = vector.load %arg7[%c1, %c0_64, %c0_65] : memref<2x32x128xf32, #tpu.memory_space<vmem>>, vector<1x32x128xf32>
    %171 = vector.shape_cast %170 : vector<1x32x128xf32> to vector<32x128xf32>
    %c1_66 = arith.constant 1 : index
    %c0_67 = arith.constant 0 : index
    %c0_68 = arith.constant 0 : index
    %172 = vector.load %arg8[%c1_66, %c0_67, %c0_68] : memref<2x1x128xf32, #tpu.memory_space<vmem>>, vector<1x1x128xf32>
    %173 = vector.shape_cast %172 : vector<1x1x128xf32> to vector<1x128xf32>
    %174 = vector.extract_strided_slice %171 {offsets = [0, 0], sizes = [32, 96], strides = [1, 1]} : vector<32x128xf32> to vector<32x96xf32>
    %cst_69 = arith.constant dense<0.000000e+00> : vector<16x96xf32>
    %175 = tpu.matmul %169, %174, %cst_69 {dimension_numbers = #tpu.dot_dimension_numbers<[1], [0], [0], [1], [0, 0, 1, 1], [], []>} : vector<16x32xf32>, vector<32x96xf32>, vector<16x96xf32> -> vector<16x96xf32>
    %176 = vector.extract_strided_slice %173 {offsets = [0, 0], sizes = [1, 96], strides = [1, 1]} : vector<1x128xf32> to vector<1x96xf32>
    %177 = vector.broadcast %176 : vector<1x96xf32> to vector<16x96xf32>
    %178 = arith.addf %175, %177 : vector<16x96xf32>
    %179 = vector.extract_strided_slice %178 {offsets = [0, 0], sizes = [16, 8], strides = [1, 1]} : vector<16x96xf32> to vector<16x8xf32>
    %180 = vector.extract_strided_slice %178 {offsets = [0, 32], sizes = [16, 8], strides = [1, 1]} : vector<16x96xf32> to vector<16x8xf32>
    "tpu.trace_start"() <{level = 10 : i32, message = "qd,kd->qk"}> : () -> ()
    %cst_70 = arith.constant dense<0.000000e+00> : vector<16x16xf32>
    %181 = tpu.matmul %179, %180, %cst_70 {dimension_numbers = #tpu.dot_dimension_numbers<[1], [1], [0], [0], [0, 0, 1, 0], [], []>} : vector<16x8xf32>, vector<16x8xf32>, vector<16x16xf32> -> vector<16x16xf32>
    "tpu.trace_stop"() : () -> ()
    %182 = vector.extract_strided_slice %178 {offsets = [0, 8], sizes = [16, 8], strides = [1, 1]} : vector<16x96xf32> to vector<16x8xf32>
    %183 = vector.extract_strided_slice %178 {offsets = [0, 40], sizes = [16, 8], strides = [1, 1]} : vector<16x96xf32> to vector<16x8xf32>
    "tpu.trace_start"() <{level = 10 : i32, message = "qd,kd->qk"}> : () -> ()
    %cst_71 = arith.constant dense<0.000000e+00> : vector<16x16xf32>
    %184 = tpu.matmul %182, %183, %cst_71 {dimension_numbers = #tpu.dot_dimension_numbers<[1], [1], [0], [0], [0, 0, 1, 0], [], []>} : vector<16x8xf32>, vector<16x8xf32>, vector<16x16xf32> -> vector<16x16xf32>
    "tpu.trace_stop"() : () -> ()
    %185 = vector.extract_strided_slice %178 {offsets = [0, 16], sizes = [16, 8], strides = [1, 1]} : vector<16x96xf32> to vector<16x8xf32>
    %186 = vector.extract_strided_slice %178 {offsets = [0, 48], sizes = [16, 8], strides = [1, 1]} : vector<16x96xf32> to vector<16x8xf32>
    "tpu.trace_start"() <{level = 10 : i32, message = "qd,kd->qk"}> : () -> ()
    %cst_72 = arith.constant dense<0.000000e+00> : vector<16x16xf32>
    %187 = tpu.matmul %185, %186, %cst_72 {dimension_numbers = #tpu.dot_dimension_numbers<[1], [1], [0], [0], [0, 0, 1, 0], [], []>} : vector<16x8xf32>, vector<16x8xf32>, vector<16x16xf32> -> vector<16x16xf32>
    "tpu.trace_stop"() : () -> ()
    %188 = vector.extract_strided_slice %178 {offsets = [0, 24], sizes = [16, 8], strides = [1, 1]} : vector<16x96xf32> to vector<16x8xf32>
    %189 = vector.extract_strided_slice %178 {offsets = [0, 56], sizes = [16, 8], strides = [1, 1]} : vector<16x96xf32> to vector<16x8xf32>
    "tpu.trace_start"() <{level = 10 : i32, message = "qd,kd->qk"}> : () -> ()
    %cst_73 = arith.constant dense<0.000000e+00> : vector<16x16xf32>
    %190 = tpu.matmul %188, %189, %cst_73 {dimension_numbers = #tpu.dot_dimension_numbers<[1], [1], [0], [0], [0, 0, 1, 0], [], []>} : vector<16x8xf32>, vector<16x8xf32>, vector<16x16xf32> -> vector<16x16xf32>
    "tpu.trace_stop"() : () -> ()
    %191 = tpu.concatenate %181, %184, %187, %190 in 0 : vector<16x16xf32>, vector<16x16xf32>, vector<16x16xf32>, vector<16x16xf32> -> vector<64x16xf32>
    %cst_74 = arith.constant 0.353553385 : f32
    %192 = vector.broadcast %cst_74 : f32 to vector<64x16xf32>
    %193 = arith.mulf %191, %192 : vector<64x16xf32>
    %194 = arith.addf %193, %37 : vector<64x16xf32>
    %cst_75 = arith.constant dense<0xFF800000> : vector<64xf32>
    %195 = vector.multi_reduction <maximumf>, %194, %cst_75 [1] : vector<64x16xf32> to vector<64xf32>
    %196 = vector.shape_cast %195 : vector<64xf32> to vector<64x1xf32>
    %197 = vector.broadcast %196 : vector<64x1xf32> to vector<64x16xf32>
    %198 = arith.subf %194, %197 : vector<64x16xf32>
    %199 = math.exp %198 : vector<64x16xf32>
    %cst_76 = arith.constant dense<0.000000e+00> : vector<64xf32>
    %200 = vector.multi_reduction <add>, %199, %cst_76 [1] : vector<64x16xf32> to vector<64xf32>
    %201 = vector.shape_cast %200 : vector<64xf32> to vector<64x1xf32>
    %202 = tpu.reciprocal %201 {approx = true} : vector<64x1xf32> -> vector<64x1xf32>
    %203 = vector.broadcast %202 : vector<64x1xf32> to vector<64x16xf32>
    %204 = arith.mulf %199, %203 : vector<64x16xf32>
    %205 = vector.extract_strided_slice %204 {offsets = [0, 0], sizes = [16, 16], strides = [1, 1]} : vector<64x16xf32> to vector<16x16xf32>
    %206 = vector.extract_strided_slice %178 {offsets = [0, 64], sizes = [16, 8], strides = [1, 1]} : vector<16x96xf32> to vector<16x8xf32>
    %cst_77 = arith.constant dense<0.000000e+00> : vector<16x8xf32>
    %207 = tpu.matmul %205, %206, %cst_77 {dimension_numbers = #tpu.dot_dimension_numbers<[1], [0], [0], [1], [0, 0, 1, 1], [], []>} : vector<16x16xf32>, vector<16x8xf32>, vector<16x8xf32> -> vector<16x8xf32>
    %208 = vector.extract_strided_slice %204 {offsets = [16, 0], sizes = [16, 16], strides = [1, 1]} : vector<64x16xf32> to vector<16x16xf32>
    %209 = vector.extract_strided_slice %178 {offsets = [0, 72], sizes = [16, 8], strides = [1, 1]} : vector<16x96xf32> to vector<16x8xf32>
    %cst_78 = arith.constant dense<0.000000e+00> : vector<16x8xf32>
    %210 = tpu.matmul %208, %209, %cst_78 {dimension_numbers = #tpu.dot_dimension_numbers<[1], [0], [0], [1], [0, 0, 1, 1], [], []>} : vector<16x16xf32>, vector<16x8xf32>, vector<16x8xf32> -> vector<16x8xf32>
    %211 = vector.extract_strided_slice %204 {offsets = [32, 0], sizes = [16, 16], strides = [1, 1]} : vector<64x16xf32> to vector<16x16xf32>
    %212 = vector.extract_strided_slice %178 {offsets = [0, 80], sizes = [16, 8], strides = [1, 1]} : vector<16x96xf32> to vector<16x8xf32>
    %cst_79 = arith.constant dense<0.000000e+00> : vector<16x8xf32>
    %213 = tpu.matmul %211, %212, %cst_79 {dimension_numbers = #tpu.dot_dimension_numbers<[1], [0], [0], [1], [0, 0, 1, 1], [], []>} : vector<16x16xf32>, vector<16x8xf32>, vector<16x8xf32> -> vector<16x8xf32>
    %214 = vector.extract_strided_slice %204 {offsets = [48, 0], sizes = [16, 16], strides = [1, 1]} : vector<64x16xf32> to vector<16x16xf32>
    %215 = vector.extract_strided_slice %178 {offsets = [0, 88], sizes = [16, 8], strides = [1, 1]} : vector<16x96xf32> to vector<16x8xf32>
    %cst_80 = arith.constant dense<0.000000e+00> : vector<16x8xf32>
    %216 = tpu.matmul %214, %215, %cst_80 {dimension_numbers = #tpu.dot_dimension_numbers<[1], [0], [0], [1], [0, 0, 1, 1], [], []>} : vector<16x16xf32>, vector<16x8xf32>, vector<16x8xf32> -> vector<16x8xf32>
    %217 = tpu.concatenate %207, %210, %213, %216 in 1 : vector<16x8xf32>, vector<16x8xf32>, vector<16x8xf32>, vector<16x8xf32> -> vector<16x32xf32>
    %218 = vector.extract_strided_slice %171 {offsets = [0, 96], sizes = [32, 32], strides = [1, 1]} : vector<32x128xf32> to vector<32x32xf32>
    %cst_81 = arith.constant dense<0.000000e+00> : vector<16x32xf32>
    %219 = tpu.matmul %217, %218, %cst_81 {dimension_numbers = #tpu.dot_dimension_numbers<[1], [0], [0], [1], [0, 0, 1, 1], [], []>} : vector<16x32xf32>, vector<32x32xf32>, vector<16x32xf32> -> vector<16x32xf32>
    %220 = vector.extract_strided_slice %173 {offsets = [0, 96], sizes = [1, 32], strides = [1, 1]} : vector<1x128xf32> to vector<1x32xf32>
    %221 = vector.broadcast %220 : vector<1x32xf32> to vector<16x32xf32>
    %222 = arith.addf %219, %221 : vector<16x32xf32>
    %c1_82 = arith.constant 1 : index
    %c0_83 = arith.constant 0 : index
    %c0_84 = arith.constant 0 : index
    %223 = vector.load %arg13[%c1_82, %c0_83, %c0_84] : memref<2x4x32xf32, #tpu.memory_space<vmem>>, vector<1x4x32xf32>
    %224 = vector.shape_cast %223 : vector<1x4x32xf32> to vector<4x32xf32>
    %225 = arith.addf %169, %222 : vector<16x32xf32>
    %226 = vector.extract_strided_slice %224 {offsets = [0, 0], sizes = [1, 32], strides = [1, 1]} : vector<4x32xf32> to vector<1x32xf32>
    %227 = vector.extract_strided_slice %224 {offsets = [1, 0], sizes = [1, 32], strides = [1, 1]} : vector<4x32xf32> to vector<1x32xf32>
    %cst_85 = arith.constant dense<0.000000e+00> : vector<16xf32>
    %228 = vector.multi_reduction <add>, %225, %cst_85 [1] : vector<16x32xf32> to vector<16xf32>
    %229 = vector.shape_cast %228 : vector<16xf32> to vector<16x1xf32>
    %cst_86 = arith.constant 3.200000e+01 : f32
    %230 = vector.broadcast %cst_86 : f32 to vector<16x1xf32>
    %231 = arith.divf %229, %230 : vector<16x1xf32>
    %232 = vector.broadcast %231 : vector<16x1xf32> to vector<16x32xf32>
    %233 = arith.subf %225, %232 : vector<16x32xf32>
    %234 = arith.mulf %233, %233 : vector<16x32xf32>
    %cst_87 = arith.constant dense<0.000000e+00> : vector<16xf32>
    %235 = vector.multi_reduction <add>, %234, %cst_87 [1] : vector<16x32xf32> to vector<16xf32>
    %236 = vector.shape_cast %235 : vector<16xf32> to vector<16x1xf32>
    %cst_88 = arith.constant 3.200000e+01 : f32
    %237 = vector.broadcast %cst_88 : f32 to vector<16x1xf32>
    %238 = arith.divf %236, %237 : vector<16x1xf32>
    %239 = vector.broadcast %231 : vector<16x1xf32> to vector<16x32xf32>
    %240 = arith.subf %225, %239 : vector<16x32xf32>
    %cst_89 = arith.constant 9.99999996E-13 : f32
    %241 = vector.broadcast %cst_89 : f32 to vector<16x1xf32>
    %242 = arith.addf %238, %241 : vector<16x1xf32>
    %243 = math.rsqrt %242 : vector<16x1xf32>
    %244 = vector.broadcast %243 : vector<16x1xf32> to vector<16x32xf32>
    %245 = arith.mulf %240, %244 : vector<16x32xf32>
    %246 = vector.broadcast %226 : vector<1x32xf32> to vector<16x32xf32>
    %247 = arith.mulf %245, %246 : vector<16x32xf32>
    %248 = vector.broadcast %227 : vector<1x32xf32> to vector<16x32xf32>
    %249 = arith.addf %247, %248 : vector<16x32xf32>
    %c1_90 = arith.constant 1 : index
    %c0_91 = arith.constant 0 : index
    %c0_92 = arith.constant 0 : index
    %250 = vector.load %arg9[%c1_90, %c0_91, %c0_92] : memref<2x32x64xf32, #tpu.memory_space<vmem>>, vector<1x32x64xf32>
    %251 = vector.shape_cast %250 : vector<1x32x64xf32> to vector<32x64xf32>
    %cst_93 = arith.constant dense<0.000000e+00> : vector<16x64xf32>
    %252 = tpu.matmul %249, %251, %cst_93 {dimension_numbers = #tpu.dot_dimension_numbers<[1], [0], [0], [1], [0, 0, 1, 1], [], []>} : vector<16x32xf32>, vector<32x64xf32>, vector<16x64xf32> -> vector<16x64xf32>
    %c1_94 = arith.constant 1 : index
    %c0_95 = arith.constant 0 : index
    %c0_96 = arith.constant 0 : index
    %253 = vector.load %arg10[%c1_94, %c0_95, %c0_96] : memref<2x1x64xf32, #tpu.memory_space<vmem>>, vector<1x1x64xf32>
    %254 = vector.shape_cast %253 : vector<1x1x64xf32> to vector<1x64xf32>
    %255 = vector.broadcast %254 : vector<1x64xf32> to vector<16x64xf32>
    %256 = arith.addf %252, %255 : vector<16x64xf32>
    %257 = arith.mulf %256, %256 : vector<16x64xf32>
    %258 = arith.mulf %256, %257 : vector<16x64xf32>
    %cst_97 = arith.constant 4.471500e-02 : f32
    %259 = vector.broadcast %cst_97 : f32 to vector<16x64xf32>
    %260 = arith.mulf %259, %258 : vector<16x64xf32>
    %261 = arith.addf %256, %260 : vector<16x64xf32>
    %cst_98 = arith.constant 0.797884583 : f32
    %262 = vector.broadcast %cst_98 : f32 to vector<16x64xf32>
    %263 = arith.mulf %262, %261 : vector<16x64xf32>
    %264 = math.tanh %263 : vector<16x64xf32>
    %cst_99 = arith.constant 1.000000e+00 : f32
    %265 = vector.broadcast %cst_99 : f32 to vector<16x64xf32>
    %266 = arith.addf %265, %264 : vector<16x64xf32>
    %cst_100 = arith.constant 5.000000e-01 : f32
    %267 = vector.broadcast %cst_100 : f32 to vector<16x64xf32>
    %268 = arith.mulf %267, %266 : vector<16x64xf32>
    %269 = arith.mulf %256, %268 : vector<16x64xf32>
    %c1_101 = arith.constant 1 : index
    %c0_102 = arith.constant 0 : index
    %c0_103 = arith.constant 0 : index
    %270 = vector.load %arg11[%c1_101, %c0_102, %c0_103] : memref<2x64x32xf32, #tpu.memory_space<vmem>>, vector<1x64x32xf32>
    %271 = vector.shape_cast %270 : vector<1x64x32xf32> to vector<64x32xf32>
    %cst_104 = arith.constant dense<0.000000e+00> : vector<16x32xf32>
    %272 = tpu.matmul %269, %271, %cst_104 {dimension_numbers = #tpu.dot_dimension_numbers<[1], [0], [0], [1], [0, 0, 1, 1], [], []>} : vector<16x64xf32>, vector<64x32xf32>, vector<16x32xf32> -> vector<16x32xf32>
    %c1_105 = arith.constant 1 : index
    %c0_106 = arith.constant 0 : index
    %c0_107 = arith.constant 0 : index
    %273 = vector.load %arg12[%c1_105, %c0_106, %c0_107] : memref<2x1x32xf32, #tpu.memory_space<vmem>>, vector<1x1x32xf32>
    %274 = vector.shape_cast %273 : vector<1x1x32xf32> to vector<1x32xf32>
    %275 = vector.broadcast %274 : vector<1x32xf32> to vector<16x32xf32>
    %276 = arith.addf %272, %275 : vector<16x32xf32>
    %277 = arith.addf %249, %276 : vector<16x32xf32>
    %278 = vector.extract_strided_slice %224 {offsets = [2, 0], sizes = [1, 32], strides = [1, 1]} : vector<4x32xf32> to vector<1x32xf32>
    %279 = vector.extract_strided_slice %224 {offsets = [3, 0], sizes = [1, 32], strides = [1, 1]} : vector<4x32xf32> to vector<1x32xf32>
    %cst_108 = arith.constant dense<0.000000e+00> : vector<16xf32>
    %280 = vector.multi_reduction <add>, %277, %cst_108 [1] : vector<16x32xf32> to vector<16xf32>
    %281 = vector.shape_cast %280 : vector<16xf32> to vector<16x1xf32>
    %cst_109 = arith.constant 3.200000e+01 : f32
    %282 = vector.broadcast %cst_109 : f32 to vector<16x1xf32>
    %283 = arith.divf %281, %282 : vector<16x1xf32>
    %284 = vector.broadcast %283 : vector<16x1xf32> to vector<16x32xf32>
    %285 = arith.subf %277, %284 : vector<16x32xf32>
    %286 = arith.mulf %285, %285 : vector<16x32xf32>
    %cst_110 = arith.constant dense<0.000000e+00> : vector<16xf32>
    %287 = vector.multi_reduction <add>, %286, %cst_110 [1] : vector<16x32xf32> to vector<16xf32>
    %288 = vector.shape_cast %287 : vector<16xf32> to vector<16x1xf32>
    %cst_111 = arith.constant 3.200000e+01 : f32
    %289 = vector.broadcast %cst_111 : f32 to vector<16x1xf32>
    %290 = arith.divf %288, %289 : vector<16x1xf32>
    %291 = vector.broadcast %283 : vector<16x1xf32> to vector<16x32xf32>
    %292 = arith.subf %277, %291 : vector<16x32xf32>
    %cst_112 = arith.constant 9.99999996E-13 : f32
    %293 = vector.broadcast %cst_112 : f32 to vector<16x1xf32>
    %294 = arith.addf %290, %293 : vector<16x1xf32>
    %295 = math.rsqrt %294 : vector<16x1xf32>
    %296 = vector.broadcast %295 : vector<16x1xf32> to vector<16x32xf32>
    %297 = arith.mulf %292, %296 : vector<16x32xf32>
    %298 = vector.broadcast %278 : vector<1x32xf32> to vector<16x32xf32>
    %299 = arith.mulf %297, %298 : vector<16x32xf32>
    %300 = vector.broadcast %279 : vector<1x32xf32> to vector<16x32xf32>
    %301 = arith.addf %299, %300 : vector<16x32xf32>
    %c0_113 = arith.constant 0 : index
    %c0_114 = arith.constant 0 : index
    %302 = vector.load %arg2[%c0_113, %c0_114] : memref<8x2xi32, #tpu.memory_space<vmem>>, vector<8x2xi32>
    %303 = vector.extract_strided_slice %302 {offsets = [0, 0], sizes = [8, 1], strides = [1, 1]} : vector<8x2xi32> to vector<8x1xi32>
    %304 = vector.extract_strided_slice %302 {offsets = [0, 1], sizes = [8, 1], strides = [1, 1]} : vector<8x2xi32> to vector<8x1xi32>
    %305 = tpu.iota {dimensions = array<i32: 1>} : vector<8x16xi32>
    %306 = vector.broadcast %303 : vector<8x1xi32> to vector<8x16xi32>
    %307 = arith.cmpi eq, %305, %306 : vector<8x16xi32>
    %308 = arith.extui %307 : vector<8x16xi1> to vector<8x16xi32>
    %309 = arith.sitofp %308 : vector<8x16xi32> to vector<8x16xf32>
    %310 = vector.broadcast %304 : vector<8x1xi32> to vector<8x16xi32>
    %311 = arith.cmpi eq, %305, %310 : vector<8x16xi32>
    %312 = arith.extui %311 : vector<8x16xi1> to vector<8x16xi32>
    %313 = arith.sitofp %312 : vector<8x16xi32> to vector<8x16xf32>
    %314 = arith.addf %309, %313 : vector<8x16xf32>
    %cst_115 = arith.constant dense<0.000000e+00> : vector<8x32xf32>
    %315 = tpu.matmul %314, %301, %cst_115 {dimension_numbers = #tpu.dot_dimension_numbers<[1], [0], [0], [1], [0, 0, 1, 1], [], []>} : vector<8x16xf32>, vector<16x32xf32>, vector<8x32xf32> -> vector<8x32xf32>
    %c0_116 = arith.constant 0 : index
    %c0_117 = arith.constant 0 : index
    %316 = vector.load %arg14[%c0_116, %c0_117] : memref<32x6xf32, #tpu.memory_space<vmem>>, vector<32x6xf32>
    %cst_118 = arith.constant dense<0.000000e+00> : vector<8x6xf32>
    %317 = tpu.matmul %315, %316, %cst_118 {dimension_numbers = #tpu.dot_dimension_numbers<[1], [0], [0], [1], [0, 0, 1, 1], [], []>} : vector<8x32xf32>, vector<32x6xf32>, vector<8x6xf32> -> vector<8x6xf32>
    %c0_119 = arith.constant 0 : index
    %c0_120 = arith.constant 0 : index
    %318 = vector.load %arg15[%c0_119, %c0_120] : memref<1x6xf32, #tpu.memory_space<vmem>>, vector<1x6xf32>
    %319 = vector.broadcast %318 : vector<1x6xf32> to vector<8x6xf32>
    %320 = arith.addf %317, %319 : vector<8x6xf32>
    %c0_121 = arith.constant 0 : index
    %c0_122 = arith.constant 0 : index
    %321 = vector.load %arg3[%c0_121, %c0_122] : memref<8x1xi32, #tpu.memory_space<vmem>>, vector<8x1xi32>
    %c-1_i32 = arith.constant -1 : i32
    %322 = vector.broadcast %c-1_i32 : i32 to vector<8x1xi32>
    %323 = arith.cmpi ne, %321, %322 : vector<8x1xi32>
    %324 = arith.extui %323 : vector<8x1xi1> to vector<8x1xi32>
    %325 = arith.sitofp %324 : vector<8x1xi32> to vector<8x1xf32>
    %c-1_i32_123 = arith.constant -1 : i32
    %326 = vector.broadcast %c-1_i32_123 : i32 to vector<8x1xi32>
    %327 = arith.cmpi eq, %321, %326 : vector<8x1xi32>
    %c0_i32 = arith.constant 0 : i32
    %328 = vector.broadcast %c0_i32 : i32 to vector<8x1xi32>
    %329 = arith.select %327, %328, %321 : vector<8x1xi1>, vector<8x1xi32>
    %330 = tpu.iota {dimensions = array<i32: 1>} : vector<8x6xi32>
    %331 = vector.broadcast %329 : vector<8x1xi32> to vector<8x6xi32>
    %332 = arith.cmpi eq, %330, %331 : vector<8x6xi32>
    %333 = arith.extui %332 : vector<8x6xi1> to vector<8x6xi32>
    %334 = arith.sitofp %333 : vector<8x6xi32> to vector<8x6xf32>
    %cst_124 = arith.constant dense<0xFF800000> : vector<8xf32>
    %335 = vector.multi_reduction <maximumf>, %320, %cst_124 [1] : vector<8x6xf32> to vector<8xf32>
    %336 = vector.shape_cast %335 : vector<8xf32> to vector<8x1xf32>
    %337 = vector.broadcast %336 : vector<8x1xf32> to vector<8x6xf32>
    %338 = arith.subf %320, %337 : vector<8x6xf32>
    %339 = math.exp %338 : vector<8x6xf32>
    %cst_125 = arith.constant dense<0.000000e+00> : vector<8xf32>
    %340 = vector.multi_reduction <add>, %339, %cst_125 [1] : vector<8x6xf32> to vector<8xf32>
    %341 = vector.shape_cast %340 : vector<8xf32> to vector<8x1xf32>
    %342 = math.log %341 : vector<8x1xf32>
    %343 = arith.addf %336, %342 : vector<8x1xf32>
    %344 = arith.mulf %334, %320 : vector<8x6xf32>
    %cst_126 = arith.constant dense<0.000000e+00> : vector<8xf32>
    %345 = vector.multi_reduction <add>, %344, %cst_126 [1] : vector<8x6xf32> to vector<8xf32>
    %346 = vector.shape_cast %345 : vector<8xf32> to vector<8x1xf32>
    %347 = arith.subf %343, %346 : vector<8x1xf32>
    %348 = arith.mulf %347, %325 : vector<8x1xf32>
    %cst_127 = arith.constant dense<0.000000e+00> : vector<1xf32>
    %349 = vector.multi_reduction <add>, %348, %cst_127 [0] : vector<8x1xf32> to vector<1xf32>
    %350 = vector.shape_cast %349 : vector<1xf32> to vector<1x1xf32>
    %cst_128 = arith.constant dense<0.000000e+00> : vector<1xf32>
    %351 = vector.multi_reduction <add>, %325, %cst_128 [0] : vector<8x1xf32> to vector<1xf32>
    %352 = vector.shape_cast %351 : vector<1xf32> to vector<1x1xf32>
    %cst_129 = arith.constant 1.000000e+00 : f32
    %353 = vector.broadcast %cst_129 : f32 to vector<1x1xf32>
    %354 = arith.maximumf %352, %353 : vector<1x1xf32>
    %355 = arith.divf %350, %354 : vector<1x1xf32>
    %c0_130 = arith.constant 0 : index
    %c0_131 = arith.constant 0 : index
    %356 = vector.load %arg16[%c0_130, %c0_131] : memref<1x1xf32, #tpu.memory_space<vmem>>, vector<1x1xf32>
    tpu.vector_store %arg16[%c0_130, %c0_131], %355 {strides = array<i32>} : memref<1x1xf32, #tpu.memory_space<vmem>>, vector<1x1xf32>,
    return
  }
}

</mosaic_0001>

<bundles_post_ra>
// kernel: tpu_custom_call.1
= control target key start
LH: loop header
LB: loop body
LE: loop exit
PB: predicated region body
PF: predicated region fallthrough
CT: control target
= control target key end

     0   :  { %s4697_s0 = inlined_call_operand.vmem [shape: s32[16,1], index: 0, kind: input, shape index: {}]   ;;  %s4698_s1 = inlined_call_operand.vmem [shape: f32[16,16], index: 1, kind: input, shape index: {}]   ;;  %s4699_s2 = inlined_call_operand.vmem [shape: s32[8,2], index: 2, kind: input, shape index: {}]   ;;  %s4700_s3 = inlined_call_operand.vmem [shape: s32[8,1], index: 3, kind: input, shape index: {}]   ;;  %s4701_s4 = inlined_call_operand.vmem [shape: f32[50,32], index: 4, kind: input, shape index: {}]   ;;  %s4702_s5 = inlined_call_operand.vmem [shape: f32[8,32], index: 5, kind: input, shape index: {}]   ;;  %s4703_s6 = inlined_call_operand.vmem [shape: f32[2,32], index: 6, kind: input, shape index: {}]   ;;  %s4704_s7 = inlined_call_operand.vmem [shape: f32[2,32,128], index: 7, kind: input, shape index: {}]   ;;  %s4705_s8 = inlined_call_operand.vmem [shape: f32[2,1,128], index: 8, kind: input, shape index: {}]   ;;  %s4706_s9 = inlined_call_operand.vmem [shape: f32[2,32,64], index: 9, kind: input, shape index: {}]   ;;  %s4707_s10 = inlined_call_operand.vmem [shape: f32[2,1,64], index: 10, kind: input, shape index: {}]   ;;  %s4708_s11 = inlined_call_operand.vmem [shape: f32[2,64,32], index: 11, kind: input, shape index: {}]   ;;  %s4709_s12 = inlined_call_operand.vmem [shape: f32[2,1,32], index: 12, kind: input, shape index: {}]   ;;  %s4710_s13 = inlined_call_operand.vmem [shape: f32[2,4,32], index: 13, kind: input, shape index: {}]   ;;  %s4711_s14 = inlined_call_operand.vmem [shape: f32[32,6], index: 14, kind: input, shape index: {}]   ;;  %s4712_s15 = inlined_call_operand.vmem [shape: f32[1,6], index: 15, kind: input, shape index: {}]   ;;  %s4713_s16 = inlined_call_operand.hbm [shape: f32[1,1], index: 16, kind: output, shape index: {}]  }
   0x1   :  { %4723 = sst [smem:[#allocation5_spill]] %s4697_s0 }
   0x2   :  { %s4724_s23 = sld [smem:[#allocation5_spill]]  ;;  %v70_v1 = vld [vmem:[%s4701_s4] sm:$0xff]  ;;  %v4018_v2 = vmov 0   ;;  %v71_v3 = vld [vmem:[%s4701_s4 + $0x8] sm:$0xff]  ;;  %v72_v4 = vld [vmem:[%s4701_s4 + $0x10] sm:$0xff] }
   0x3   :  { %3792 = vset.pattern.permute.xlu0 %v4018_v2  ;;  %v73_v5 = vld [vmem:[%s4701_s4 + $0x18] sm:$0xff]  ;;  %3893 = vset.pattern.permute.xlu1 %v4018_v2  ;;  %v3590_v6 = vpack.c.bf16 %v71_v3, %v70_v1 }
   0x4   :  { %v3594_v7 = vpack.c.bf16 %v73_v5, %v72_v4 }
   0x8   :  { %v54_v0 = vld [vmem:[%s4724_s23] sm:$0xff] }
   0x9   :  { %59 = vperm.xlu0 %3792, %v54_v0  }
   0xa   :  { %21 = vsyncpa [#allocation3], 0  ;;  %v55_v8 = vld [vmem:[%s4724_s23 + $0x8] sm:$0xff]  ;;  %v74_v9 = vld [vmem:[%s4701_s4 + $0x20] sm:$0xff]  ;;  %3591 = vmatprep.subr.bf16.mxu0 %v3590_v6  ;;  %vm85_vm0 = vcmask 1041408   ;;  %v56_v13 = vlaneseq  ;;  %vm78_vm1 = vcmask 408576  }
   0xb   :  { %v75_v10 = vld [vmem:[%s4701_s4 + $0x28] sm:$0xff]  ;;  %3593 = vmatpush3.bf16.msra.mxu0 %v3590_v6  ;;  %v76_v12 = vld [vmem:[%s4701_s4 + $0x30] sm:$0x3]  ;;  %v4019_v16 = vmov 0.0   ;;  %v77_v20 = vld [vmem:[%s4702_s5] sm:$0xff]  ;;  %vm165_vm4 = vcmask 261120  }
   0xc   :  { %3595 = vmatprep.subr.bf16.mxu0 %v3594_v7  ;;  %v3598_v11 = vpack.c.bf16 %v75_v10, %v74_v9  ;;  %v4153_v14 = vand.u32 127, %v56_v13  ;;  %v4169_v37 = vld [vmem:[%s4704_s7] sm:$0xff]  ;;  %v4174_v38 = vld [vmem:[%s4704_s7 + $0x8] sm:$0xff]  ;;  %v4179_v39 = vld [vmem:[%s4704_s7 + $0x10] sm:$0xff]  ;;  %v4192_v49 = vshrl.u32 %v56_v13, 7  ;;  %vm305_vm5 = vcmask 64512  }
   0xd   :  { %62 = vperm.xlu0 %3792, %v55_v8   ;;  %v3833_v40 = vpack.i.bf16 %v4174_v38, %v4169_v37  ;;  %v3602_v41 = vpack.c.bf16 %v4174_v38, %v4169_v37  ;;  %v4188_v42 = vld [vmem:[%s4704_s7 + $0x18] sm:$0xff]  ;;  %v164_v52 = vld [vmem:[%s4703_s6] sm:$0x3]  ;;  %s4020_s21 = smov 120   ;;  %s4021_s22 = smov 96   ;;  %vm4240_vm6 = vmpackc.low %vm305_vm5, %vm305_vm5  ;;  %vm678_vm7 = vcmask 130048  }
   0xe   :  { %v3606_v43 = vpack.c.bf16 %v4188_v42, %v4179_v39  ;;  %v4195_v51 = vsub.s32 0, %v4192_v49  ;;  %v4201_v53 = vsub.s32 1, %v4192_v49  ;;  %v4216_v0 = vld [vmem:[%s4705_s8] ss:$0 sm:$0xff]  ;;  %s4022_s24 = smov 88   ;;  %s4023_s25 = smov 80  }
   0xf   :  { %3597 = vmatpush3.bf16.msra.mxu0 %v3594_v7  ;;  %3603 = vmatprep.subr.bf16.mxu1 %v3602_v41  ;;  %s4024_s4 = smov 72   ;;  %s4025_s23 = smov 112   ;;  %vm1143_vm8 = vcmask 195584   ;;  %vm1412_vm9 = vcmask 523264   ;;  %vm4037_vm10 = vmmov 0   ;;  %vm3047_vm15 = vcmask 48128  }
  0x10   :  { %3599 = vmatprep.subr.bf16.mxu0 %v3598_v11  ;;  %3605 = vmatpush3.bf16.msra.mxu1 %v3602_v41  ;;  %v196_v54 = vrot.slane %v164_v52, %v4195_v51  ;;  %v202_v57 = vrot.slane %v164_v52, %v4201_v53  ;;  %s4026_s5 = smov 104   ;;  %s4028_s30 = smov 48  }
  0x11   :  { %3607 = vmatprep.subr.bf16.mxu1 %v3606_v43  ;;  %s4029_s0 = smov 56   ;;  %s4030_s17 = smov 40  }
  0x12   :  { %s4721_s18 = smov 32   ;;  %s4719_s19 = smov 8  }
  0x13   :  { %3601 = vmatpush3.bf16.msra.mxu0 %v3598_v11  ;;  %s4717_s6 = smov 16   ;;  %s4715_s20 = smov 24  }
  0x14   :  { %3351 = vmatprep.subr.msk.mxu0 %vm85_vm0, %v76_v12  ;;  %3609 = vmatpush3.bf16.msra.mxu1 %v3606_v43 }
  0x17   :  { %3352 = vmatpush3.msk.msra.mxu0 %vm85_vm0, %v76_v12 }
  0x88   :  { %v60_v15 = vpop.permute.xlu0 %59 }
  0x89   :  { %vm64_vm2 = vcmp.eq.s32.totalorder %v4153_v14, %v60_v15 }
  0x8a   :  { %v3100_v17 = vsel %vm64_vm2, 1.0, %v4019_v16  ;;  %vm3084_vm2 = vcmask 0  }
  0x8b   :  { %3353 = vmatprep.mubr.msk.f32.mxu0 %vm78_vm1, %v3100_v17 }
  0x8c   :  { %v63_v18 = vpop.permute.xlu0 %62 }
  0x8d   :  { %vm65_vm3 = vcmp.eq.s32.totalorder %v4153_v14, %v63_v18 }
  0x8e   :  { %v3101_v19 = vsel %vm65_vm3, 1.0, %v4019_v16 }
  0x8f   :  { %3354 = vmatmul.mubr.msk.f32.vlgmr.msra.gmra.mrb[0].mxu0 %vm78_vm1, %v3101_v19  ;;  %vm3066_vm1 = vcmask 7168  }
 0x162   :  { %v3355_v21 = vpop.f32.mrb[0].mxu0 }
 0x163   :  { %v155_v22 = vpop.f32.mrb[1].mxu0  ;;  %v161_v24 = vadd.f32 %v3355_v21, %v77_v20 }
 0x164   :  { %v156_v23 = vadd.f32 %v155_v22, %v77_v20 }
 0x165   :  { %v169_v26 = vsel %vm165_vm4, %v161_v24, 0.0 }
 0x166   :  { %v166_v25 = vsel %vm165_vm4, %v156_v23, 0.0 }
 0x167   :  { %167 = vadd.xlane.f32.xlu1 %v166_v25 }
 0x16b   :  { %170 = vadd.xlane.f32.xlu1 %v169_v26 }
 0x1f4   :  { %v168_v27 = vpop.xlane.xlu1 %167 }
 0x1f5   :  { %v173_v28 = vmul.f32 0.03125, %v168_v27 }
 0x1f7   :  { %v175_v29 = vsub.f32 %v156_v23, %v173_v28 }
 0x1f8   :  { %v171_v30 = vpop.xlane.xlu1 %170 }
 0x1f9   :  { %v174_v31 = vmul.f32 0.03125, %v171_v30  ;;  %v177_v32 = vmul.f32 %v175_v29, %v175_v29 }
 0x1fb   :  { %v176_v33 = vsub.f32 %v161_v24, %v174_v31  ;;  %v179_v34 = vsel %vm165_vm4, %v177_v32, 0.0 }
 0x1fc   :  { %180 = vadd.xlane.f32.xlu0 %v179_v34 }
 0x1fd   :  { %v178_v35 = vmul.f32 %v176_v33, %v176_v33 }
 0x1ff   :  { %v182_v36 = vsel %vm165_vm4, %v178_v35, 0.0 }
 0x200   :  { %183 = vadd.xlane.f32.xlu1 %v182_v36 }
 0x289   :  { %v181_v44 = vpop.xlane.xlu0 %180 }
 0x28a   :  { %v185_v45 = vmul.f32 0.03125, %v181_v44 }
 0x28c   :  { %v187_v46 = vadd.f32 1e-12, %v185_v45 }
 0x28d   :  { %v184_v47 = vpop.xlane.xlu1 %183 }
 0x28e   :  { %3896 = vrsqrt.f32 %v187_v46  ;;  %v186_v48 = vmul.f32 0.03125, %v184_v47  ;;  %v4276_v47 = vld [vmem:[%s4698_s1] sm:$0xff] }
 0x290   :  { %v188_v50 = vadd.f32 1e-12, %v186_v48 }
 0x292   :  { %3898 = vrsqrt.f32 %v188_v50 }
 0x298   :  { %v3897_v55 = vpop.eup %3896 }
 0x299   :  { %v191_v56 = vmul.f32 %v3897_v55, %v175_v29 }
 0x29b   :  { %v197_v58 = vmul.f32 %v196_v54, %v191_v56 }
 0x29c   :  { %v3899_v59 = vpop.eup %3898 }
 0x29d   :  { %v192_v60 = vmul.f32 %v3899_v59, %v176_v33  ;;  %v4205_v61 = vadd.f32 %v202_v57, %v197_v58  ;;  %v4269_v33 = vld [vmem:[%s4698_s1 + $0x8] sm:$0xff]  ;;  %s4027_s1 = smov 64  }
 0x29f   :  { %v198_v62 = vmul.f32 %v196_v54, %v192_v60  ;;  %3364 = vmatprep.mubr.msk.f32.mxu1 %vm165_vm4, %v4205_v61 }
 0x2a1   :  { %v4209_v63 = vadd.f32 %v202_v57, %v198_v62 }
 0x2a3   :  { %3365 = vmatmul.mubr.msk.f32.vlgmr.msra.gmra.mrb[0].mxu1 %vm165_vm4, %v4209_v63 }
 0x376   :  { %v3366_v1 = vpop.f32.mrb[0].mxu1 }
 0x377   :  { %v296_v3 = vadd.f32 %v3366_v1, %v4216_v0  ;;  %v290_v4 = vpop.f32.mrb[1].mxu1 }
 0x378   :  { %v291_v5 = vadd.f32 %v4216_v0, %v290_v4 }
 0x37a   :  { %389 = vrot.lane.b32.xlu0 %v291_v5, %s4020_s21  ;;  %3371 = vmatprep.mubr.msk.f32.mxu1 %vm305_vm5, %v291_v5  ;;  %v4222_v6 = vpack.i.bf16 %v296_v3, %v291_v5 }
 0x37c   :  { %3794 = vrot.lane.b32.xlu1 %v4222_v6, %s4021_s22 }
 0x380   :  { %3799 = vrot.lane.b32.xlu1 %v4222_v6, %s4022_s24 }
 0x384   :  { %3804 = vrot.lane.b32.xlu1 %v4222_v6, %s4023_s25 }
 0x388   :  { %3809 = vrot.lane.b32.xlu1 %v4222_v6, %s4024_s4 }
 0x38c   :  { %391 = vrot.lane.b32.xlu1 %v296_v3, %s4020_s21 }
 0x390   :  { %482 = vrot.lane.b32.xlu1 %v296_v3, %s4025_s23 }
 0x394   :  { %480 = vrot.lane.b32.xlu1 %v291_v5, %s4025_s23 }
 0x398   :  { %571 = vrot.lane.b32.xlu1 %v291_v5, %s4026_s5 }
 0x39c   :  { %573 = vrot.lane.b32.xlu1 %v296_v3, %s4026_s5 }
 0x3ec   :  { %v390_v7 = vpop.permute.xlu0 %389 }
 0x3ed   :  { %3378 = vmatprep.mubr.msk.f32.mxu0 %vm305_vm5, %v390_v7 }
 0x3ee   :  { %v3795_v8 = vpop.permute.xlu1 %3794 }
 0x3ef   :  { %v3797_v9 = vunpack.i.h.bf16 %v3795_v8  ;;  %v3796_v10 = vunpack.i.l.bf16 %v3795_v8 }
 0x3f1   :  { %v3610_v12 = vpack.c.bf16 %v3797_v9, %v3796_v10 }
 0x3f2   :  { %v3800_v13 = vpop.permute.xlu1 %3799 }
 0x3f3   :  { %v3802_v15 = vunpack.i.h.bf16 %v3800_v13  ;;  %v3801_v17 = vunpack.i.l.bf16 %v3800_v13  ;;  %3612 = vmatprep.subr.msk.bf16.mxu1 %vm4240_vm6, %v3610_v12 }
 0x3f4   :  { %3615 = vmatpush3.bf16.xpose.msk.msra.mxu1 %vm4240_vm6, %v3610_v12 }
 0x3f5   :  { %v3616_v18 = vpack.c.bf16 %v3802_v15, %v3801_v17 }
 0x3f6   :  { %v3805_v19 = vpop.permute.xlu1 %3804 }
 0x3f7   :  { %v3807_v20 = vunpack.i.h.bf16 %v3805_v19  ;;  %v3806_v21 = vunpack.i.l.bf16 %v3805_v19  ;;  %3618 = vmatprep.subr.msk.bf16.mxu0 %vm4240_vm6, %v3616_v18 }
 0x3f8   :  { %3621 = vmatpush3.bf16.xpose.msk.msra.mxu0 %vm4240_vm6, %v3616_v18 }
 0x3f9   :  { %v3622_v22 = vpack.c.bf16 %v3807_v20, %v3806_v21 }
 0x3fa   :  { %v3810_v23 = vpop.permute.xlu1 %3809 }
 0x3fb   :  { %v3812_v24 = vunpack.i.h.bf16 %v3810_v23  ;;  %v3811_v25 = vunpack.i.l.bf16 %v3810_v23  ;;  %3372 = vmatmul.mubr.msk.f32.vlgmr.msra.gmra.mrb[2].mxu1 %vm305_vm5, %v296_v3  ;;  %3624 = vmatprep.subr.msk.bf16.mxu1 %vm4240_vm6, %v3622_v22 }
 0x3fc   :  { %3627 = vmatpush3.bf16.xpose.msk.msra.mxu1 %vm4240_vm6, %v3622_v22 }
 0x3fd   :  { %v3628_v26 = vpack.c.bf16 %v3812_v24, %v3811_v25 }
 0x3fe   :  { %v392_v27 = vpop.permute.xlu1 %391 }
 0x3ff   :  { %3379 = vmatmul.mubr.msk.f32.vlgmr.msra.gmra.mrb[2].mxu0 %vm305_vm5, %v392_v27  ;;  %3630 = vmatprep.subr.msk.bf16.mxu0 %vm4240_vm6, %v3628_v26 }
 0x400   :  { %3633 = vmatpush3.bf16.xpose.msk.msra.mxu0 %vm4240_vm6, %v3628_v26 }
 0x402   :  { %v483_v28 = vpop.permute.xlu1 %482 }
 0x406   :  { %v481_v29 = vpop.permute.xlu1 %480 }
 0x407   :  { %3385 = vmatprep.mubr.msk.f32.mxu1 %vm305_vm5, %v481_v29 }
 0x408   :  { %3386 = vmatmul.mubr.msk.f32.vlgmr.msra.gmra.mrb[4].mxu1 %vm305_vm5, %v483_v28 }
 0x40a   :  { %v572_v30 = vpop.permute.xlu1 %571 }
 0x40b   :  { %3392 = vmatprep.mubr.msk.f32.mxu0 %vm305_vm5, %v572_v30 }
 0x40e   :  { %v574_v31 = vpop.permute.xlu1 %573 }
 0x40f   :  { %3393 = vmatmul.mubr.msk.f32.vlgmr.msra.gmra.mrb[4].mxu0 %vm305_vm5, %v574_v31 }
 0x4ce   :  { %v3373_v32 = vpop.f32.mrb[2].mxu1 }
 0x4cf   :  { %v663_v34 = vmul.f32 0.35355338, %v3373_v32  ;;  %v380_v35 = vpop.f32.mrb[3].mxu1 }
 0x4d0   :  { %v662_v43 = vmul.f32 0.35355338, %v380_v35 }
 0x4d1   :  { %v671_v36 = vadd.f32 %v663_v34, %v4269_v33 }
 0x4d2   :  { %v3380_v41 = vpop.f32.mrb[2].mxu0  ;;  %v670_v54 = vadd.f32 %v662_v43, %v4276_v47 }
 0x4d3   :  { %v665_v44 = vmul.f32 0.35355338, %v3380_v41  ;;  %v471_v45 = vpop.f32.mrb[3].mxu0  ;;  %v682_v46 = vsel %vm678_vm7, %v671_v36, -inf }
 0x4d4   :  { %683 = vmax.xlane.f32.xlu1 %v682_v46  ;;  %v664_v50 = vmul.f32 0.35355338, %v471_v45  ;;  %v679_v56 = vsel %vm678_vm7, %v670_v54, -inf }
 0x4d5   :  { %v673_v48 = vadd.f32 %v665_v44, %v4269_v33 }
 0x4d6   :  { %v672_v57 = vadd.f32 %v664_v50, %v4276_v47 }
 0x4d7   :  { %v688_v52 = vsel %vm678_vm7, %v673_v48, -inf }
 0x4d8   :  { %689 = vmax.xlane.f32.xlu0 %v688_v52  ;;  %v685_v62 = vsel %vm678_vm7, %v672_v57, -inf }
 0x4db   :  { %v3387_v55 = vpop.f32.mrb[4].mxu1 }
 0x4dc   :  { %v667_v58 = vmul.f32 0.35355338, %v3387_v55  ;;  %680 = vmax.xlane.f32.xlu0 %v679_v56  ;;  %v562_v59 = vpop.f32.mrb[5].mxu1 }
 0x4dd   :  { %v666_v60 = vmul.f32 0.35355338, %v562_v59 }
 0x4de   :  { %v675_v3 = vadd.f32 %v667_v58, %v4269_v33 }
 0x4df   :  { %v4285_v1 = vadd.f32 %v666_v60, %v4276_v47 }
 0x4e0   :  { %686 = vmax.xlane.f32.xlu0 %v685_v62  ;;  %v694_v9 = vsel %vm678_vm7, %v675_v3, -inf }
 0x4e1   :  { %v691_v4 = vsel %vm678_vm7, %v4285_v1, -inf }
 0x4e2   :  { %v3394_v5 = vpop.f32.mrb[4].mxu0  ;;  %692 = vmax.xlane.f32.xlu1 %v691_v4 }
 0x4e3   :  { %v669_v7 = vmul.f32 0.35355338, %v3394_v5  ;;  %v653_v8 = vpop.f32.mrb[5].mxu0 }
 0x4e4   :  { %v668_v10 = vmul.f32 0.35355338, %v653_v8  ;;  %695 = vmax.xlane.f32.xlu0 %v694_v9 }
 0x4e5   :  { %v677_v12 = vadd.f32 %v669_v7, %v4269_v33 }
 0x4e6   :  { %v4293_v13 = vadd.f32 %v668_v10, %v4276_v47 }
 0x4e7   :  { %v700_v15 = vsel %vm678_vm7, %v677_v12, -inf }
 0x4e8   :  { %701 = vmax.xlane.f32.xlu0 %v700_v15  ;;  %v697_v17 = vsel %vm678_vm7, %v4293_v13, -inf }
 0x4e9   :  { %698 = vmax.xlane.f32.xlu1 %v697_v17 }
 0x4fa   :  { %3814 = vrot.lane.b32.xlu1 %v4222_v6, %s4027_s1 }
 0x561   :  { %v684_v18 = vpop.xlane.xlu1 %683 }
 0x562   :  { %v704_v19 = vsub.f32 %v671_v36, %v684_v18 }
 0x564   :  { %v713_v20 = vmul.f32 1.442695, %v704_v19 }
 0x565   :  { %v690_v21 = vpop.xlane.xlu0 %689 }
 0x566   :  { %3900 = vpow2.f32 %v713_v20  ;;  %v706_v22 = vsub.f32 %v673_v48, %v690_v21 }
 0x568   :  { %v717_v23 = vmul.f32 1.442695, %v706_v22 }
 0x569   :  { %v681_v24 = vpop.xlane.xlu0 %680 }
 0x56a   :  { %3902 = vpow2.f32 %v717_v23  ;;  %v703_v25 = vsub.f32 %v670_v54, %v681_v24 }
 0x56c   :  { %v711_v26 = vmul.f32 1.442695, %v703_v25 }
 0x56d   :  { %v687_v27 = vpop.xlane.xlu0 %686 }
 0x56e   :  { %3904 = vpow2.f32 %v711_v26  ;;  %v705_v28 = vsub.f32 %v672_v57, %v687_v27 }
 0x56f   :  { %v693_v34 = vpop.xlane.xlu1 %692 }
 0x570   :  { %v4300_v29 = vpop.eup %3900  ;;  %v715_v30 = vmul.f32 1.442695, %v705_v28  ;;  %v707_v5 = vsub.f32 %v4285_v1, %v693_v34 }
 0x571   :  { %v696_v31 = vpop.xlane.xlu0 %695  ;;  %v730_v32 = vsel %vm678_vm7, %v4300_v29, 0.0 }
 0x572   :  { %3906 = vpow2.f32 %v715_v30  ;;  %v708_v35 = vsub.f32 %v675_v3, %v696_v31  ;;  %731 = vadd.xlane.f32.xlu0 %v730_v32  ;;  %v719_v7 = vmul.f32 1.442695, %v707_v5 }
 0x574   :  { %v4304_v36 = vpop.eup %3902  ;;  %v721_v41 = vmul.f32 1.442695, %v708_v35 }
 0x575   :  { %v702_v43 = vpop.xlane.xlu0 %701  ;;  %v736_v44 = vsel %vm678_vm7, %v4304_v36, 0.0 }
 0x576   :  { %3908 = vpow2.f32 %v721_v41  ;;  %v710_v45 = vsub.f32 %v677_v12, %v702_v43  ;;  %737 = vadd.xlane.f32.xlu0 %v736_v44  ;;  %v699_v46 = vpop.xlane.xlu1 %698 }
 0x577   :  { %v709_v8 = vsub.f32 %v4293_v13, %v699_v46 }
 0x578   :  { %v3905_v48 = vpop.eup %3904  ;;  %v725_v50 = vmul.f32 1.442695, %v710_v45 }
 0x579   :  { %v727_v52 = vsel %vm678_vm7, %v3905_v48, 0.0  ;;  %v723_v9 = vmul.f32 1.442695, %v709_v8 }
 0x57a   :  { %3910 = vpow2.f32 %v725_v50  ;;  %728 = vadd.xlane.f32.xlu1 %v727_v52  ;;  %v3815_v54 = vpop.permute.xlu1 %3814 }
 0x57b   :  { %v3817_v55 = vunpack.i.h.bf16 %v3815_v54  ;;  %v3816_v56 = vunpack.i.l.bf16 %v3815_v54  ;;  %3912 = vpow2.f32 %v719_v7 }
 0x57c   :  { %v3907_v57 = vpop.eup %3906  ;;  %3914 = vpow2.f32 %v723_v9 }
 0x57d   :  { %v3634_v58 = vpack.c.bf16 %v3817_v55, %v3816_v56  ;;  %v733_v59 = vsel %vm678_vm7, %v3907_v57, 0.0 }
 0x57e   :  { %734 = vadd.xlane.f32.xlu1 %v733_v59 }
 0x57f   :  { %3635 = vmatprep.subr.bf16.mxu1 %v3634_v58 }
 0x580   :  { %v4310_v60 = vpop.eup %3908  ;;  %3637 = vmatpush3.bf16.msra.mxu1 %v3634_v58 }
 0x581   :  { %v742_v62 = vsel %vm678_vm7, %v4310_v60, 0.0 }
 0x582   :  { %743 = vadd.xlane.f32.xlu0 %v742_v62 }
 0x584   :  { %v4314_v3 = vpop.eup %3910 }
 0x585   :  { %v748_v4 = vsel %vm678_vm7, %v4314_v3, 0.0  ;;  %v3913_v10 = vpop.eup %3912 }
 0x586   :  { %749 = vadd.xlane.f32.xlu0 %v748_v4  ;;  %v739_v12 = vsel %vm678_vm7, %v3913_v10, 0.0  ;;  %v3915_v15 = vpop.eup %3914  ;;  %v3838_v4 = vpack.i.bf16 %v4188_v42, %v4179_v39 }
 0x587   :  { %v745_v17 = vsel %vm678_vm7, %v3915_v15, 0.0 }
 0x58f   :  { %3824 = vrot.lane.b32.xlu1 %v4222_v6, %s4028_s30 }
 0x59c   :  { %3819 = vrot.lane.b32.xlu0 %v4222_v6, %s4029_s0 }
 0x5a0   :  { %3834 = vrot.lane.b32.xlu0 %v3833_v40, %s4721_s18 }
 0x5b3   :  { %740 = vadd.xlane.f32.xlu1 %v739_v12 }
 0x5b7   :  { %746 = vadd.xlane.f32.xlu1 %v745_v17 }
 0x5c8   :  { %3829 = vrot.lane.b32.xlu1 %v4222_v6, %s4030_s17 }
 0x5cc   :  { %3839 = vrot.lane.b32.xlu1 %v3838_v4, %s4721_s18 }
 0x5ff   :  { %v732_v18 = vpop.xlane.xlu0 %731 }
 0x600   :  { %3916 = vrcp.f32 %v732_v18 }
 0x603   :  { %v738_v13 = vpop.xlane.xlu0 %737 }
 0x607   :  { %v729_v1 = vpop.xlane.xlu1 %728 }
 0x608   :  { %3918 = vrcp.f32 %v729_v1 }
 0x60a   :  { %v3917_v24 = vpop.eup %3916 }
 0x60b   :  { %v735_v19 = vpop.xlane.xlu1 %734  ;;  %v760_v30 = vmul.f32 %v3917_v24, %v4300_v29 }
 0x60c   :  { %3920 = vrcp.f32 %v735_v19 }
 0x60d   :  { %3922 = vrcp.f32 %v738_v13 }
 0x60f   :  { %v744_v20 = vpop.xlane.xlu0 %743  ;;  %v3825_v21 = vpop.permute.xlu1 %3824 }
 0x610   :  { %v3827_v22 = vunpack.i.h.bf16 %v3825_v21  ;;  %v3826_v23 = vunpack.i.l.bf16 %v3825_v21  ;;  %3924 = vrcp.f32 %v744_v20 }
 0x612   :  { %v3919_v25 = vpop.eup %3918  ;;  %v3642_v26 = vpack.c.bf16 %v3827_v22, %v3826_v23 }
 0x613   :  { %v750_v27 = vpop.xlane.xlu0 %749  ;;  %v759_v28 = vmul.f32 %v3919_v25, %v3905_v48 }
 0x614   :  { %3643 = vmatprep.subr.bf16.mxu0 %v3642_v26 }
 0x615   :  { %3399 = vmatprep.mubr.msk.f32.mxu1 %vm678_vm7, %v759_v28  ;;  %3645 = vmatpush3.bf16.msra.mxu0 %v3642_v26 }
 0x616   :  { %v3921_v6 = vpop.eup %3920  ;;  %3400 = vmatmul.mubr.msk.f32.vlgmr.msra.gmra.mrb[6].mxu1 %vm678_vm7, %v760_v30 }
 0x617   :  { %v3820_v31 = vpop.permute.xlu0 %3819  ;;  %v761_v32 = vmul.f32 %v3921_v6, %v3907_v57  ;;  %v3923_v43 = vpop.eup %3922 }
 0x618   :  { %v3822_v34 = vunpack.i.h.bf16 %v3820_v31  ;;  %v3821_v35 = vunpack.i.l.bf16 %v3820_v31  ;;  %v762_v44 = vmul.f32 %v3923_v43, %v4304_v36 }
 0x619   :  { %3406 = vmatprep.mubr.msk.f32.mxu1 %vm678_vm7, %v761_v32 }
 0x61a   :  { %v3638_v41 = vpack.c.bf16 %v3822_v34, %v3821_v35  ;;  %v3925_v52 = vpop.eup %3924 }
 0x61b   :  { %v764_v57 = vmul.f32 %v3925_v52, %v4310_v60  ;;  %v3835_v60 = vpop.permute.xlu0 %3834 }
 0x61c   :  { %3639 = vmatprep.subr.bf16.mxu1 %v3638_v41  ;;  %v3837_v7 = vunpack.i.h.bf16 %v3835_v60  ;;  %v3836_v8 = vunpack.i.l.bf16 %v3835_v60 }
 0x61d   :  { %3641 = vmatpush3.bf16.msra.mxu1 %v3638_v41 }
 0x620   :  { %3407 = vmatmul.mubr.msk.f32.vlgmr.msra.gmra.mrb[8].mxu1 %vm678_vm7, %v762_v44 }
 0x640   :  { %v741_v29 = vpop.xlane.xlu1 %740 }
 0x641   :  { %3926 = vrcp.f32 %v741_v29 }
 0x642   :  { %3928 = vrcp.f32 %v750_v27 }
 0x644   :  { %v747_v45 = vpop.xlane.xlu1 %746 }
 0x645   :  { %3930 = vrcp.f32 %v747_v45 }
 0x648   :  { %v3830_v46 = vpop.permute.xlu1 %3829 }
 0x649   :  { %v3832_v48 = vunpack.i.h.bf16 %v3830_v46  ;;  %v3831_v50 = vunpack.i.l.bf16 %v3830_v46 }
 0x64b   :  { %v3927_v54 = vpop.eup %3926  ;;  %v3646_v55 = vpack.c.bf16 %v3832_v48, %v3831_v50 }
 0x64c   :  { %v763_v56 = vmul.f32 %v3927_v54, %v3913_v10  ;;  %v3929_v58 = vpop.eup %3928  ;;  %v3840_v5 = vpop.permute.xlu1 %3839  ;;  %v3650_v10 = vpack.c.bf16 %v3837_v7, %v3836_v8 }
 0x64d   :  { %3647 = vmatprep.subr.bf16.mxu1 %v3646_v55  ;;  %v766_v62 = vmul.f32 %v3929_v58, %v4314_v3  ;;  %v3842_v3 = vunpack.i.h.bf16 %v3840_v5  ;;  %v3841_v9 = vunpack.i.l.bf16 %v3840_v5  ;;  %v1289_v58 = vld [vmem:[%s4706_s9 + $0x10] sm:$0xff] }
 0x64e   :  { %3413 = vmatprep.mubr.msk.f32.mxu0 %vm678_vm7, %v763_v56  ;;  %3649 = vmatpush3.bf16.msra.mxu1 %v3646_v55  ;;  %v1288_v56 = vld [vmem:[%s4706_s9 + $0x8] sm:$0xff] }
 0x64f   :  { %v3931_v36 = vpop.eup %3930  ;;  %3414 = vmatmul.mubr.msk.f32.vlgmr.msra.gmra.mrb[6].mxu0 %vm678_vm7, %v764_v57  ;;  %v3654_v12 = vpack.c.bf16 %v3842_v3, %v3841_v9  ;;  %3651 = vmatprep.subr.bf16.mxu0 %v3650_v10  ;;  %v4384_v3 = vld [vmem:[%s4710_s13] sm:$0xf] }
 0x650   :  { %v765_v59 = vmul.f32 %v3931_v36, %v3915_v15  ;;  %3653 = vmatpush3.bf16.msra.mxu0 %v3650_v10  ;;  %v1290_v36 = vld [vmem:[%s4706_s9 + $0x18] sm:$0xff]  ;;  %v1278_v9 = vrot.slane %v4384_v3, %v4195_v51 }
 0x651   :  { %3655 = vmatprep.subr.bf16.mxu0 %v3654_v12 }
 0x652   :  { %3420 = vmatprep.mubr.msk.f32.mxu1 %vm678_vm7, %v765_v59  ;;  %v3662_v59 = vpack.c.bf16 %v1290_v36, %v1289_v58  ;;  %v3137_v58 = vld [vmem:[%s4709_s12] ss:$0 sm:$0xff] }
 0x653   :  { %3421 = vmatmul.mubr.msk.f32.vlgmr.msra.gmra.mrb[10].mxu1 %vm678_vm7, %v766_v62 }
 0x654   :  { %3657 = vmatpush3.bf16.msra.mxu0 %v3654_v12 }
 0x6e9   :  { %v3401_v39 = vpop.f32.mrb[6].mxu1 }
 0x6ea   :  { %v845_v42 = vpop.f32.mrb[7].mxu1 }
 0x6f3   :  { %v3408_v15 = vpop.f32.mrb[8].mxu1 }
 0x6f4   :  { %1119 = vrot.lane.b32.xlu1 %v3408_v15, %s4719_s19  ;;  %v932_v37 = vpop.f32.mrb[9].mxu1  ;;  %v1284_v15 = vrot.slane %v4384_v3, %v4201_v53 }
 0x6f5   :  { %1117 = vrot.lane.b32.xlu0 %v932_v37, %s4719_s19 }
 0x722   :  { %v3415_v38 = vpop.f32.mrb[6].mxu0 }
 0x723   :  { %v1019_v40 = vpop.f32.mrb[7].mxu0  ;;  %1127 = vrot.lane.b32.xlu1 %v3415_v38, %s4717_s6 }
 0x724   :  { %1125 = vrot.lane.b32.xlu0 %v1019_v40, %s4717_s6 }
 0x726   :  { %v3422_v17 = vpop.f32.mrb[10].mxu1 }
 0x727   :  { %1135 = vrot.lane.b32.xlu1 %v3422_v17, %s4715_s20  ;;  %v1106_v18 = vpop.f32.mrb[11].mxu1 }
 0x728   :  { %1133 = vrot.lane.b32.xlu0 %v1106_v18, %s4715_s20  ;;  %v1397_v18 = vld [vmem:[%s4708_s11] sm:$0xff] }
 0x72c   :  { %1162 = vrot.lane.b32.xlu0 %v4216_v0, %s4721_s18 }
 0x766   :  { %v1120_v1 = vpop.permute.xlu1 %1119 }
 0x767   :  { %v1118_v13 = vpop.permute.xlu0 %1117  ;;  %v1140_v23 = vsel %vm305_vm5, %v3401_v39, %v1120_v1  ;;  %v1398_v1 = vld [vmem:[%s4708_s11 + $0x8] sm:$0xff] }
 0x768   :  { %v1139_v21 = vsel %vm305_vm5, %v845_v42, %v1118_v13  ;;  %v3666_v13 = vpack.c.bf16 %v1398_v1, %v1397_v18  ;;  %v4436_v1 = vld [vmem:[%s4704_s7 + $0x28] sm:$0xff] }
 0x76a   :  { %3667 = vmatprep.subr.bf16.mxu0 %v3666_v13 }
 0x795   :  { %v1128_v19 = vpop.permute.xlu1 %1127 }
 0x796   :  { %v1126_v20 = vpop.permute.xlu0 %1125  ;;  %v1142_v26 = vsel %vm678_vm7, %v1140_v23, %v1128_v19  ;;  %v1399_v19 = vld [vmem:[%s4708_s11 + $0x10] sm:$0xff]  ;;  %v1402_v23 = vld [vmem:[%s4708_s11 + $0x28] sm:$0xff] }
 0x797   :  { %v1141_v24 = vsel %vm678_vm7, %v1139_v21, %v1126_v20  ;;  %v1400_v20 = vld [vmem:[%s4708_s11 + $0x18] sm:$0xff] }
 0x798   :  { %v3670_v21 = vpack.c.bf16 %v1400_v20, %v1399_v19  ;;  %v4443_v19 = vld [vmem:[%s4704_s7 + $0x30] sm:$0xff]  ;;  %v4448_v20 = vld [vmem:[%s4704_s7 + $0x38] sm:$0xff] }
 0x799   :  { %v1136_v22 = vpop.permute.xlu1 %1135 }
 0x79a   :  { %v1134_v25 = vpop.permute.xlu0 %1133  ;;  %v1145_v28 = vsel %vm1143_vm8, %v1142_v26, %v1136_v22  ;;  %v1401_v22 = vld [vmem:[%s4708_s11 + $0x20] sm:$0xff]  ;;  %v1404_v26 = vld [vmem:[%s4708_s11 + $0x38] sm:$0xff] }
 0x79b   :  { %v1144_v27 = vsel %vm1143_vm8, %v1141_v24, %v1134_v25  ;;  %v3674_v24 = vpack.c.bf16 %v1402_v23, %v1401_v22  ;;  %v1403_v25 = vld [vmem:[%s4708_s11 + $0x30] sm:$0xff] }
 0x79c   :  { %3431 = vmatprep.mubr.msk.f32.mxu0 %vm165_vm4, %v1144_v27  ;;  %v3678_v27 = vpack.c.bf16 %v1404_v26, %v1403_v25 }
 0x79d   :  { %3432 = vmatmul.mubr.msk.f32.vlgmr.msra.gmra.mrb[8].mxu0 %vm165_vm4, %v1145_v28  ;;  %v3134_v28 = vld [vmem:[%s4707_s10] ss:$0 sm:$0xff] }
 0x79e   :  { %v1163_v0 = vpop.permute.xlu0 %1162  ;;  %3669 = vmatpush3.bf16.msra.mxu0 %v3666_v13 }
 0x79f   :  { %3671 = vmatprep.subr.bf16.mxu0 %v3670_v21 }
 0x7a2   :  { %3673 = vmatpush3.bf16.msra.mxu0 %v3670_v21  ;;  %v3686_v21 = vpack.c.bf16 %v4448_v20, %v4443_v19 }
 0x7a3   :  { %3675 = vmatprep.subr.bf16.mxu0 %v3674_v24 }
 0x7a6   :  { %3677 = vmatpush3.bf16.msra.mxu0 %v3674_v24 }
 0x7a7   :  { %3679 = vmatprep.subr.bf16.mxu0 %v3678_v27 }
 0x7aa   :  { %3681 = vmatpush3.bf16.msra.mxu0 %v3678_v27 }
 0x870   :  { %v3433_v30 = vpop.f32.mrb[8].mxu0 }
 0x871   :  { %v1243_v6 = vadd.f32 %v3433_v30, %v1163_v0  ;;  %v1237_v31 = vpop.f32.mrb[9].mxu0 }
 0x872   :  { %v1238_v32 = vadd.f32 %v1237_v31, %v1163_v0 }
 0x873   :  { %v1248_v34 = vadd.f32 %v1243_v6, %v4209_v63 }
 0x874   :  { %v1247_v35 = vadd.f32 %v1238_v32, %v4205_v61  ;;  %v1287_v61 = vld [vmem:[%s4706_s9] sm:$0xff] }
 0x875   :  { %v1252_v41 = vsel %vm165_vm4, %v1248_v34, 0.0  ;;  %v3658_v57 = vpack.c.bf16 %v1288_v56, %v1287_v61 }
 0x876   :  { %1253 = vadd.xlane.f32.xlu0 %v1252_v41  ;;  %v1249_v43 = vsel %vm165_vm4, %v1247_v35, 0.0 }
 0x877   :  { %1250 = vadd.xlane.f32.xlu1 %v1249_v43  ;;  %3659 = vmatprep.subr.bf16.mxu1 %v3658_v57 }
 0x878   :  { %3661 = vmatpush3.bf16.msra.mxu1 %v3658_v57 }
 0x879   :  { %3663 = vmatprep.subr.bf16.mxu1 %v3662_v59 }
 0x87c   :  { %3665 = vmatpush3.bf16.msra.mxu1 %v3662_v59 }
 0x903   :  { %v1254_v44 = vpop.xlane.xlu0 %1253 }
 0x904   :  { %v1256_v29 = vmul.f32 0.03125, %v1254_v44  ;;  %v1251_v45 = vpop.xlane.xlu1 %1250 }
 0x905   :  { %v1255_v46 = vmul.f32 0.03125, %v1251_v45 }
 0x906   :  { %v1258_v48 = vsub.f32 %v1248_v34, %v1256_v29 }
 0x907   :  { %v1257_v50 = vsub.f32 %v1247_v35, %v1255_v46 }
 0x908   :  { %v1260_v52 = vmul.f32 %v1258_v48, %v1258_v48 }
 0x909   :  { %v1259_v54 = vmul.f32 %v1257_v50, %v1257_v50 }
 0x90a   :  { %v1264_v55 = vsel %vm165_vm4, %v1260_v52, 0.0 }
 0x90b   :  { %1265 = vadd.xlane.f32.xlu1 %v1264_v55  ;;  %v1261_v63 = vsel %vm165_vm4, %v1259_v54, 0.0 }
 0x90c   :  { %1262 = vadd.xlane.f32.xlu0 %v1261_v63 }
 0x998   :  { %v1266_v62 = vpop.xlane.xlu1 %1265 }
 0x999   :  { %v1268_v4 = vmul.f32 0.03125, %v1266_v62  ;;  %v1263_v60 = vpop.xlane.xlu0 %1262 }
 0x99a   :  { %v1267_v5 = vmul.f32 0.03125, %v1263_v60 }
 0x99b   :  { %v1270_v7 = vadd.f32 1e-12, %v1268_v4 }
 0x99c   :  { %v1269_v8 = vadd.f32 1e-12, %v1267_v5 }
 0x99d   :  { %3932 = vrsqrt.f32 %v1270_v7 }
 0x99e   :  { %3934 = vrsqrt.f32 %v1269_v8 }
 0x9a7   :  { %v3933_v10 = vpop.eup %3932 }
 0x9a8   :  { %v3935_v12 = vpop.eup %3934  ;;  %v1274_v39 = vmul.f32 %v3933_v10, %v1258_v48 }
 0x9a9   :  { %v1273_v42 = vmul.f32 %v3935_v12, %v1257_v50 }
 0x9aa   :  { %v1280_v37 = vmul.f32 %v1278_v9, %v1274_v39 }
 0x9ab   :  { %v1279_v38 = vmul.f32 %v1278_v9, %v1273_v42 }
 0x9ac   :  { %v1286_v17 = vadd.f32 %v1284_v15, %v1280_v37 }
 0x9ad   :  { %v1285_v40 = vadd.f32 %v1284_v15, %v1279_v38 }
 0x9af   :  { %3442 = vmatprep.mubr.msk.f32.mxu1 %vm165_vm4, %v1285_v40 }
 0x9b0   :  { %3443 = vmatmul.mubr.msk.f32.vlgmr.msra.gmra.mrb[12].mxu1 %vm165_vm4, %v1286_v17 }
 0xa83   :  { %v3444_v0 = vpop.f32.mrb[12].mxu1 }
 0xa84   :  { %v1376_v30 = vadd.f32 %v3444_v0, %v3134_v28  ;;  %v1370_v6 = vpop.f32.mrb[13].mxu1  ;;  %v1530_v0 = vsub.s32 3, %v4192_v49 }
 0xa85   :  { %v1371_v31 = vadd.f32 %v3134_v28, %v1370_v6  ;;  %v1524_v28 = vsub.s32 2, %v4192_v49  ;;  %v2952_v49 = vld [vmem:[%s4711_s14 + $0x8] sm:$0xff] }
 0xa86   :  { %v1380_v32 = vmul.f32 %v1376_v30, %v1376_v30 }
 0xa87   :  { %v1379_v34 = vmul.f32 %v1371_v31, %v1371_v31 }
 0xa88   :  { %v1382_v35 = vmul.f32 %v1380_v32, %v1376_v30 }
 0xa89   :  { %v1381_v41 = vmul.f32 %v1379_v34, %v1371_v31 }
 0xa8a   :  { %v1384_v43 = vmul.f32 0.044715, %v1382_v35  ;;  %v1531_v35 = vrot.slane %v4384_v3, %v1530_v0 }
 0xa8b   :  { %v1383_v44 = vmul.f32 0.044715, %v1381_v41 }
 0xa8c   :  { %v1386_v29 = vadd.f32 %v1384_v43, %v1376_v30 }
 0xa8d   :  { %v1385_v45 = vadd.f32 %v1383_v44, %v1371_v31 }
 0xa8e   :  { %v1388_v46 = vmul.f32 0.7978846, %v1386_v29 }
 0xa8f   :  { %v1387_v48 = vmul.f32 0.7978846, %v1385_v45  ;;  %v4471_v45 = vld [vmem:[%s4705_s8 + $0x1] ss:$0 sm:$0xff]  ;;  %s4727_s8 = smov 32  }
 0xa90   :  { %3936 = vtanh.f32 %v1388_v46 }
 0xa91   :  { %3938 = vtanh.f32 %v1387_v48 }
 0xa9a   :  { %v3937_v50 = vpop.eup %3936 }
 0xa9b   :  { %v3939_v52 = vpop.eup %3938  ;;  %v1392_v54 = vadd.f32 1.0, %v3937_v50 }
 0xa9c   :  { %v1391_v55 = vadd.f32 1.0, %v3939_v52 }
 0xa9d   :  { %v1394_v63 = vmul.f32 0.5, %v1392_v54 }
 0xa9e   :  { %v1393_v61 = vmul.f32 0.5, %v1391_v55 }
 0xa9f   :  { %v1396_v57 = vmul.f32 %v1394_v63, %v1376_v30  ;;  %v1525_v30 = vrot.slane %v4384_v3, %v1524_v28 }
 0xaa0   :  { %v1395_v56 = vmul.f32 %v1393_v61, %v1371_v31 }
 0xaa2   :  { %3461 = vmatprep.mubr.msk.f32.mxu0 %vm1412_vm9, %v1395_v56 }
 0xaa3   :  { %3462 = vmatmul.mubr.msk.f32.vlgmr.msra.gmra.mrb[10].mxu0 %vm1412_vm9, %v1396_v57 }
 0xb76   :  { %v3463_v36 = vpop.f32.mrb[10].mxu0 }
 0xb77   :  { %v1491_v59 = vadd.f32 %v3463_v36, %v3137_v58  ;;  %v1485_v62 = vpop.f32.mrb[11].mxu0 }
 0xb78   :  { %v1486_v4 = vadd.f32 %v3137_v58, %v1485_v62 }
 0xb79   :  { %v1495_v60 = vadd.f32 %v1491_v59, %v1286_v17 }
 0xb7a   :  { %v1494_v5 = vadd.f32 %v1486_v4, %v1285_v40  ;;  %v4431_v40 = vld [vmem:[%s4704_s7 + $0x20] sm:$0xff] }
 0xb7b   :  { %v1499_v7 = vsel %vm165_vm4, %v1495_v60, 0.0  ;;  %v3682_v13 = vpack.c.bf16 %v4436_v1, %v4431_v40 }
 0xb7c   :  { %1500 = vadd.xlane.f32.xlu1 %v1499_v7  ;;  %v1496_v8 = vsel %vm165_vm4, %v1494_v5, 0.0 }
 0xb7d   :  { %1497 = vadd.xlane.f32.xlu0 %v1496_v8  ;;  %3683 = vmatprep.subr.bf16.mxu1 %v3682_v13 }
 0xb7e   :  { %3685 = vmatpush3.bf16.msra.mxu1 %v3682_v13 }
 0xb7f   :  { %3687 = vmatprep.subr.bf16.mxu1 %v3686_v21 }
 0xb82   :  { %3689 = vmatpush3.bf16.msra.mxu1 %v3686_v21 }
 0xc09   :  { %v1501_v9 = vpop.xlane.xlu1 %1500 }
 0xc0a   :  { %v1503_v10 = vmul.f32 0.03125, %v1501_v9  ;;  %v1498_v12 = vpop.xlane.xlu0 %1497 }
 0xc0b   :  { %v1502_v39 = vmul.f32 0.03125, %v1498_v12 }
 0xc0c   :  { %v1505_v42 = vsub.f32 %v1495_v60, %v1503_v10 }
 0xc0d   :  { %v1504_v15 = vsub.f32 %v1494_v5, %v1502_v39 }
 0xc0e   :  { %v1507_v37 = vmul.f32 %v1505_v42, %v1505_v42 }
 0xc0f   :  { %v1506_v38 = vmul.f32 %v1504_v15, %v1504_v15 }
 0xc10   :  { %v1511_v18 = vsel %vm165_vm4, %v1507_v37, 0.0 }
 0xc11   :  { %1512 = vadd.xlane.f32.xlu1 %v1511_v18  ;;  %v1508_v17 = vsel %vm165_vm4, %v1506_v38, 0.0 }
 0xc12   :  { %1509 = vadd.xlane.f32.xlu0 %v1508_v17 }
 0xc9e   :  { %v1513_v22 = vpop.xlane.xlu1 %1512 }
 0xc9f   :  { %v1515_v23 = vmul.f32 0.03125, %v1513_v22  ;;  %v1510_v24 = vpop.xlane.xlu0 %1509 }
 0xca0   :  { %v1514_v25 = vmul.f32 0.03125, %v1510_v24 }
 0xca1   :  { %v1517_v26 = vadd.f32 1e-12, %v1515_v23 }
 0xca2   :  { %v1516_v27 = vadd.f32 1e-12, %v1514_v25 }
 0xca3   :  { %3940 = vrsqrt.f32 %v1517_v26 }
 0xca4   :  { %3942 = vrsqrt.f32 %v1516_v27 }
 0xcad   :  { %v3941_v6 = vpop.eup %3940 }
 0xcae   :  { %v3943_v31 = vpop.eup %3942  ;;  %v1521_v32 = vmul.f32 %v3941_v6, %v1505_v42 }
 0xcaf   :  { %v1520_v34 = vmul.f32 %v3943_v31, %v1504_v15 }
 0xcb0   :  { %v1527_v41 = vmul.f32 %v1525_v30, %v1521_v32 }
 0xcb1   :  { %v1526_v43 = vmul.f32 %v1525_v30, %v1520_v34 }
 0xcb2   :  { %v4462_v29 = vadd.f32 %v1531_v35, %v1527_v41 }
 0xcb3   :  { %v4460_v44 = vadd.f32 %v1531_v35, %v1526_v43 }
 0xcb5   :  { %3472 = vmatprep.mubr.msk.f32.mxu1 %vm165_vm4, %v4460_v44 }
 0xcb6   :  { %3473 = vmatmul.mubr.msk.f32.vlgmr.msra.gmra.mrb[14].mxu1 %vm165_vm4, %v4462_v29 }
 0xd89   :  { %v3474_v46 = vpop.f32.mrb[14].mxu1 }
 0xd8a   :  { %v1625_v3 = vadd.f32 %v3474_v46, %v4471_v45  ;;  %v1619_v48 = vpop.f32.mrb[15].mxu1 }
 0xd8b   :  { %v1620_v50 = vadd.f32 %v4471_v45, %v1619_v48 }
 0xd8d   :  { %3479 = vmatprep.mubr.msk.f32.mxu1 %vm305_vm5, %v1620_v50  ;;  %v4476_v52 = vpack.i.bf16 %v1625_v3, %v1620_v50 }
 0xd8f   :  { %3849 = vrot.lane.b32.xlu1 %v4476_v52, %s4022_s24  ;;  %3844 = vrot.lane.b32.xlu0 %v4476_v52, %s4021_s22  ;;  %s4729_s22 = smov 16   ;;  %s4730_s24 = smov 24  }
 0xd93   :  { %3854 = vrot.lane.b32.xlu1 %v4476_v52, %s4023_s25  ;;  %3859 = vrot.lane.b32.xlu0 %v4476_v52, %s4024_s4 }
 0xd97   :  { %1717 = vrot.lane.b32.xlu1 %v1620_v50, %s4020_s21  ;;  %1719 = vrot.lane.b32.xlu0 %v1625_v3, %s4020_s21  ;;  %s4728_s21 = smov 8  }
 0xd9b   :  { %1808 = vrot.lane.b32.xlu1 %v1620_v50, %s4025_s23  ;;  %1810 = vrot.lane.b32.xlu0 %v1625_v3, %s4025_s23 }
 0xd9f   :  { %1899 = vrot.lane.b32.xlu1 %v1620_v50, %s4026_s5  ;;  %1901 = vrot.lane.b32.xlu0 %v1625_v3, %s4026_s5 }
 0xe01   :  { %v3850_v54 = vpop.permute.xlu1 %3849  ;;  %v3845_v55 = vpop.permute.xlu0 %3844 }
 0xe02   :  { %v3852_v63 = vunpack.i.h.bf16 %v3850_v54  ;;  %v3851_v61 = vunpack.i.l.bf16 %v3850_v54  ;;  %v3847_v56 = vunpack.i.h.bf16 %v3845_v55  ;;  %v3846_v57 = vunpack.i.l.bf16 %v3845_v55 }
 0xe04   :  { %v3696_v58 = vpack.c.bf16 %v3852_v63, %v3851_v61  ;;  %v3690_v36 = vpack.c.bf16 %v3847_v56, %v3846_v57 }
 0xe05   :  { %v3855_v59 = vpop.permute.xlu1 %3854  ;;  %v3860_v62 = vpop.permute.xlu0 %3859 }
 0xe06   :  { %v3857_v4 = vunpack.i.h.bf16 %v3855_v59  ;;  %v3856_v60 = vunpack.i.l.bf16 %v3855_v59  ;;  %v3862_v5 = vunpack.i.h.bf16 %v3860_v62  ;;  %v3861_v7 = vunpack.i.l.bf16 %v3860_v62  ;;  %3692 = vmatprep.subr.msk.bf16.mxu1 %vm4240_vm6, %v3690_v36  ;;  %3698 = vmatprep.subr.msk.bf16.mxu0 %vm4240_vm6, %v3696_v58 }
 0xe07   :  { %3695 = vmatpush3.bf16.xpose.msk.msra.mxu1 %vm4240_vm6, %v3690_v36  ;;  %3701 = vmatpush3.bf16.xpose.msk.msra.mxu0 %vm4240_vm6, %v3696_v58 }
 0xe08   :  { %v3702_v8 = vpack.c.bf16 %v3857_v4, %v3856_v60  ;;  %v3708_v9 = vpack.c.bf16 %v3862_v5, %v3861_v7 }
 0xe09   :  { %v1718_v10 = vpop.permute.xlu1 %1717  ;;  %v1720_v12 = vpop.permute.xlu0 %1719 }
 0xe0a   :  { %3486 = vmatprep.mubr.msk.f32.mxu0 %vm305_vm5, %v1718_v10  ;;  %3704 = vmatprep.subr.msk.bf16.mxu1 %vm4240_vm6, %v3702_v8 }
 0xe0b   :  { %3710 = vmatprep.subr.msk.bf16.mxu0 %vm4240_vm6, %v3708_v9 }
 0xe0d   :  { %v1809_v39 = vpop.permute.xlu1 %1808  ;;  %v1811_v42 = vpop.permute.xlu0 %1810 }
 0xe0e   :  { %3480 = vmatmul.mubr.msk.f32.vlgmr.msra.gmra.mrb[16].mxu1 %vm305_vm5, %v1625_v3  ;;  %3487 = vmatmul.mubr.msk.f32.vlgmr.msra.gmra.mrb[12].mxu0 %vm305_vm5, %v1720_v12 }
 0xe0f   :  { %3707 = vmatpush3.bf16.xpose.msk.msra.mxu1 %vm4240_vm6, %v3702_v8  ;;  %3493 = vmatprep.mubr.msk.f32.mxu1 %vm305_vm5, %v1809_v39 }
 0xe10   :  { %3713 = vmatpush3.bf16.xpose.msk.msra.mxu0 %vm4240_vm6, %v3708_v9 }
 0xe11   :  { %v1900_v15 = vpop.permute.xlu1 %1899  ;;  %v1902_v37 = vpop.permute.xlu0 %1901 }
 0xe12   :  { %3500 = vmatprep.mubr.msk.f32.mxu0 %vm305_vm5, %v1900_v15 }
 0xe16   :  { %3494 = vmatmul.mubr.msk.f32.vlgmr.msra.gmra.mrb[18].mxu1 %vm305_vm5, %v1811_v42 }
 0xe17   :  { %3501 = vmatmul.mubr.msk.f32.vlgmr.msra.gmra.mrb[14].mxu0 %vm305_vm5, %v1902_v37 }
 0xee1   :  { %v3481_v38 = vpop.f32.mrb[16].mxu1  ;;  %v3488_v18 = vpop.f32.mrb[12].mxu0 }
 0xee2   :  { %v1991_v17 = vmul.f32 0.35355338, %v3481_v38  ;;  %v1708_v13 = vpop.f32.mrb[17].mxu1  ;;  %v1799_v21 = vpop.f32.mrb[13].mxu0  ;;  %v1993_v22 = vmul.f32 0.35355338, %v3488_v18 }
 0xee3   :  { %v1990_v23 = vmul.f32 0.35355338, %v1708_v13  ;;  %v1992_v24 = vmul.f32 0.35355338, %v1799_v21 }
 0xee4   :  { %v1999_v25 = vadd.f32 %v1991_v17, %v4269_v33  ;;  %v2001_v6 = vadd.f32 %v1993_v22, %v4269_v33 }
 0xee5   :  { %v1998_v11 = vadd.f32 %v1990_v23, %v4276_v47  ;;  %v2000_v27 = vadd.f32 %v1992_v24, %v4276_v47 }
 0xee6   :  { %v2009_v26 = vsel %vm678_vm7, %v1999_v25, -inf  ;;  %v2015_v48 = vsel %vm678_vm7, %v2001_v6, -inf }
 0xee7   :  { %2010 = vmax.xlane.f32.xlu0 %v2009_v26  ;;  %v2006_v30 = vsel %vm678_vm7, %v1998_v11, -inf  ;;  %v2012_v41 = vsel %vm678_vm7, %v2000_v27, -inf }
 0xee8   :  { %2007 = vmax.xlane.f32.xlu1 %v2006_v30 }
 0xee9   :  { %v3495_v31 = vpop.f32.mrb[18].mxu1 }
 0xeea   :  { %v1995_v32 = vmul.f32 0.35355338, %v3495_v31  ;;  %v3502_v34 = vpop.f32.mrb[14].mxu0  ;;  %v1890_v35 = vpop.f32.mrb[19].mxu1 }
 0xeeb   :  { %v1997_v43 = vmul.f32 0.35355338, %v3502_v34  ;;  %v1994_v46 = vmul.f32 0.35355338, %v1890_v35  ;;  %v1981_v3 = vpop.f32.mrb[15].mxu0  ;;  %2013 = vmax.xlane.f32.xlu0 %v2012_v41 }
 0xeec   :  { %v1996_v50 = vmul.f32 0.35355338, %v1981_v3  ;;  %2016 = vmax.xlane.f32.xlu1 %v2015_v48  ;;  %v2003_v54 = vadd.f32 %v1995_v32, %v4269_v33 }
 0xeed   :  { %v2002_v55 = vadd.f32 %v1994_v46, %v4276_v47  ;;  %v2005_v56 = vadd.f32 %v1997_v43, %v4269_v33 }
 0xeee   :  { %v2021_v63 = vsel %vm678_vm7, %v2003_v54, -inf  ;;  %v2004_v57 = vadd.f32 %v1996_v50, %v4276_v47 }
 0xeef   :  { %v2018_v61 = vsel %vm678_vm7, %v2002_v55, -inf  ;;  %v2027_v58 = vsel %vm678_vm7, %v2005_v56, -inf }
 0xef0   :  { %2022 = vmax.xlane.f32.xlu1 %v2021_v63  ;;  %2019 = vmax.xlane.f32.xlu0 %v2018_v61  ;;  %v2024_v36 = vsel %vm678_vm7, %v2004_v57, -inf }
 0xef4   :  { %2028 = vmax.xlane.f32.xlu1 %v2027_v58  ;;  %2025 = vmax.xlane.f32.xlu0 %v2024_v36 }
 0xf05   :  { %3869 = vrot.lane.b32.xlu1 %v4476_v52, %s4029_s0 }
 0xf0a   :  { %3864 = vrot.lane.b32.xlu0 %v4476_v52, %s4027_s1 }
 0xf74   :  { %v2011_v59 = vpop.xlane.xlu0 %2010 }
 0xf75   :  { %v2031_v62 = vsub.f32 %v1999_v25, %v2011_v59  ;;  %v2008_v4 = vpop.xlane.xlu1 %2007  ;;  %v3883_v59 = vpack.i.bf16 %v4436_v1, %v4431_v40 }
 0xf76   :  { %v2030_v33 = vsub.f32 %v1998_v11, %v2008_v4 }
 0xf77   :  { %v2040_v60 = vmul.f32 1.442695, %v2031_v62 }
 0xf78   :  { %v2038_v47 = vmul.f32 1.442695, %v2030_v33  ;;  %v2014_v5 = vpop.xlane.xlu0 %2013 }
 0xf79   :  { %3944 = vpow2.f32 %v2040_v60  ;;  %v2032_v7 = vsub.f32 %v2000_v27, %v2014_v5  ;;  %v2017_v8 = vpop.xlane.xlu1 %2016 }
 0xf7a   :  { %3946 = vpow2.f32 %v2038_v47  ;;  %v2033_v9 = vsub.f32 %v2001_v6, %v2017_v8 }
 0xf7b   :  { %v2042_v10 = vmul.f32 1.442695, %v2032_v7 }
 0xf7c   :  { %v2044_v12 = vmul.f32 1.442695, %v2033_v9 }
 0xf7d   :  { %3948 = vpow2.f32 %v2042_v10  ;;  %v2023_v39 = vpop.xlane.xlu1 %2022  ;;  %v2020_v42 = vpop.xlane.xlu0 %2019 }
 0xf7e   :  { %3950 = vpow2.f32 %v2044_v12  ;;  %v2035_v15 = vsub.f32 %v2003_v54, %v2023_v39  ;;  %v2034_v37 = vsub.f32 %v2002_v55, %v2020_v42 }
 0xf80   :  { %v2048_v38 = vmul.f32 1.442695, %v2035_v15  ;;  %v2046_v18 = vmul.f32 1.442695, %v2034_v37 }
 0xf81   :  { %v2029_v17 = vpop.xlane.xlu1 %2028  ;;  %v2026_v13 = vpop.xlane.xlu0 %2025 }
 0xf82   :  { %3952 = vpow2.f32 %v2048_v38  ;;  %v2037_v21 = vsub.f32 %v2005_v56, %v2029_v17  ;;  %v2036_v22 = vsub.f32 %v2004_v57, %v2026_v13 }
 0xf83   :  { %v3945_v23 = vpop.eup %3944  ;;  %3954 = vpow2.f32 %v2046_v18 }
 0xf84   :  { %v3947_v24 = vpop.eup %3946  ;;  %v2052_v25 = vmul.f32 1.442695, %v2037_v21  ;;  %v2050_v11 = vmul.f32 1.442695, %v2036_v22  ;;  %v2057_v26 = vsel %vm678_vm7, %v3945_v23, 0.0 }
 0xf85   :  { %2058 = vadd.xlane.f32.xlu1 %v2057_v26  ;;  %v3870_v27 = vpop.permute.xlu1 %3869  ;;  %v3865_v30 = vpop.permute.xlu0 %3864  ;;  %v2054_v6 = vsel %vm678_vm7, %v3947_v24, 0.0 }
 0xf86   :  { %3956 = vpow2.f32 %v2052_v25  ;;  %v3867_v31 = vunpack.i.h.bf16 %v3865_v30  ;;  %2055 = vadd.xlane.f32.xlu0 %v2054_v6  ;;  %v3872_v34 = vunpack.i.h.bf16 %v3870_v27  ;;  %v3871_v35 = vunpack.i.l.bf16 %v3870_v27 }
 0xf87   :  { %v3949_v32 = vpop.eup %3948  ;;  %3958 = vpow2.f32 %v2050_v11  ;;  %v3866_v41 = vunpack.i.l.bf16 %v3865_v30 }
 0xf88   :  { %v3951_v43 = vpop.eup %3950  ;;  %v2060_v46 = vsel %vm678_vm7, %v3949_v32, 0.0  ;;  %v3718_v50 = vpack.c.bf16 %v3872_v34, %v3871_v35 }
 0xf89   :  { %v3714_v3 = vpack.c.bf16 %v3867_v31, %v3866_v41  ;;  %v2063_v48 = vsel %vm678_vm7, %v3951_v43, 0.0  ;;  %v3888_v31 = vpack.i.bf16 %v4448_v20, %v4443_v19 }
 0xf8a   :  { %2064 = vadd.xlane.f32.xlu1 %v2063_v48  ;;  %2061 = vadd.xlane.f32.xlu0 %v2060_v46 }
 0xf8b   :  { %3715 = vmatprep.subr.bf16.mxu1 %v3714_v3 }
 0xf8c   :  { %v3953_v54 = vpop.eup %3952  ;;  %3717 = vmatpush3.bf16.msra.mxu1 %v3714_v3 }
 0xf8d   :  { %v3955_v55 = vpop.eup %3954  ;;  %3719 = vmatprep.subr.bf16.mxu1 %v3718_v50  ;;  %v2069_v63 = vsel %vm678_vm7, %v3953_v54, 0.0 }
 0xf8e   :  { %2070 = vadd.xlane.f32.xlu1 %v2069_v63  ;;  %v2066_v61 = vsel %vm678_vm7, %v3955_v55, 0.0 }
 0xf8f   :  { %2067 = vadd.xlane.f32.xlu0 %v2066_v61 }
 0xf90   :  { %v3957_v56 = vpop.eup %3956 }
 0xf91   :  { %v3959_v57 = vpop.eup %3958  ;;  %v2075_v58 = vsel %vm678_vm7, %v3957_v56, 0.0 }
 0xf92   :  { %2076 = vadd.xlane.f32.xlu1 %v2075_v58  ;;  %v2072_v36 = vsel %vm678_vm7, %v3959_v57, 0.0 }
 0xf93   :  { %2073 = vadd.xlane.f32.xlu0 %v2072_v36 }
 0xfa3   :  { %3874 = vrot.lane.b32.xlu1 %v4476_v52, %s4028_s30 }
 0xfa7   :  { %3884 = vrot.lane.b32.xlu1 %v3883_v59, %s4727_s8 }
 0xfa9   :  { %3879 = vrot.lane.b32.xlu0 %v4476_v52, %s4030_s17 }
 0xfad   :  { %3889 = vrot.lane.b32.xlu0 %v3888_v31, %s4727_s8 }
0x1012   :  { %v2059_v62 = vpop.xlane.xlu1 %2058 }
0x1013   :  { %3960 = vrcp.f32 %v2059_v62  ;;  %v2056_v4 = vpop.xlane.xlu0 %2055 }
0x1014   :  { %3962 = vrcp.f32 %v2056_v4 }
0x1017   :  { %v2065_v33 = vpop.xlane.xlu1 %2064  ;;  %v2062_v60 = vpop.xlane.xlu0 %2061 }
0x1018   :  { %3964 = vrcp.f32 %v2065_v33 }
0x1019   :  { %3966 = vrcp.f32 %v2062_v60 }
0x101b   :  { %v2071_v47 = vpop.xlane.xlu1 %2070 }
0x101c   :  { %3968 = vrcp.f32 %v2071_v47  ;;  %v2068_v5 = vpop.xlane.xlu0 %2067 }
0x101d   :  { %v3961_v7 = vpop.eup %3960  ;;  %3970 = vrcp.f32 %v2068_v5 }
0x101e   :  { %v3963_v8 = vpop.eup %3962  ;;  %v2087_v10 = vmul.f32 %v3961_v7, %v3945_v23 }
0x101f   :  { %v2077_v52 = vpop.xlane.xlu1 %2076  ;;  %v2086_v9 = vmul.f32 %v3963_v8, %v3947_v24 }
0x1020   :  { %3972 = vrcp.f32 %v2077_v52  ;;  %v2074_v40 = vpop.xlane.xlu0 %2073 }
0x1021   :  { %3974 = vrcp.f32 %v2074_v40  ;;  %3507 = vmatprep.mubr.msk.f32.mxu1 %vm678_vm7, %v2086_v9 }
0x1022   :  { %v3965_v1 = vpop.eup %3964  ;;  %3508 = vmatmul.mubr.msk.f32.vlgmr.msra.gmra.mrb[20].mxu1 %vm678_vm7, %v2087_v10 }
0x1023   :  { %v3967_v12 = vpop.eup %3966  ;;  %v2089_v39 = vmul.f32 %v3965_v1, %v3951_v43  ;;  %3721 = vmatpush3.bf16.msra.mxu1 %v3718_v50  ;;  %v3875_v42 = vpop.permute.xlu1 %3874 }
0x1024   :  { %v3877_v15 = vunpack.i.h.bf16 %v3875_v42  ;;  %v3876_v37 = vunpack.i.l.bf16 %v3875_v42  ;;  %v3880_v38 = vpop.permute.xlu0 %3879  ;;  %v2088_v18 = vmul.f32 %v3967_v12, %v3949_v32 }
0x1025   :  { %v3882_v17 = vunpack.i.h.bf16 %v3880_v38  ;;  %v3881_v13 = vunpack.i.l.bf16 %v3880_v38 }
0x1026   :  { %v3969_v21 = vpop.eup %3968  ;;  %v3722_v22 = vpack.c.bf16 %v3877_v15, %v3876_v37  ;;  %3514 = vmatprep.mubr.msk.f32.mxu1 %vm678_vm7, %v2088_v18 }
0x1027   :  { %v3971_v23 = vpop.eup %3970  ;;  %v3726_v24 = vpack.c.bf16 %v3882_v17, %v3881_v13  ;;  %3515 = vmatmul.mubr.msk.f32.vlgmr.msra.gmra.mrb[22].mxu1 %vm678_vm7, %v2089_v39  ;;  %v2091_v26 = vmul.f32 %v3969_v21, %v3953_v54  ;;  %v3885_v32 = vpop.permute.xlu1 %3884 }
0x1028   :  { %3723 = vmatprep.subr.bf16.mxu0 %v3722_v22  ;;  %v2090_v25 = vmul.f32 %v3971_v23, %v3955_v55  ;;  %v3887_v34 = vunpack.i.h.bf16 %v3885_v32  ;;  %v3886_v35 = vunpack.i.l.bf16 %v3885_v32  ;;  %v3890_v43 = vpop.permute.xlu0 %3889 }
0x1029   :  { %3727 = vmatprep.subr.bf16.mxu1 %v3726_v24  ;;  %3725 = vmatpush3.bf16.msra.mxu0 %v3722_v22  ;;  %v3892_v46 = vunpack.i.h.bf16 %v3890_v43  ;;  %v3891_v3 = vunpack.i.l.bf16 %v3890_v43 }
0x102a   :  { %v3973_v11 = vpop.eup %3972  ;;  %3521 = vmatprep.mubr.msk.f32.mxu0 %vm678_vm7, %v2090_v25  ;;  %3729 = vmatpush3.bf16.msra.mxu1 %v3726_v24  ;;  %v3730_v41 = vpack.c.bf16 %v3887_v34, %v3886_v35  ;;  %v3176_v24 = vld [vmem:[%s4706_s9 + $0x28] sm:$0xff] }
0x102b   :  { %v3975_v27 = vpop.eup %3974  ;;  %v2093_v30 = vmul.f32 %v3973_v11, %v3957_v56  ;;  %v3734_v48 = vpack.c.bf16 %v3892_v46, %v3891_v3  ;;  %v3177_v11 = vld [vmem:[%s4706_s9 + $0x30] sm:$0xff] }
0x102c   :  { %3522 = vmatmul.mubr.msk.f32.vlgmr.msra.gmra.mrb[16].mxu0 %vm678_vm7, %v2091_v26  ;;  %v2092_v6 = vmul.f32 %v3975_v27, %v3959_v57  ;;  %3731 = vmatprep.subr.bf16.mxu0 %v3730_v41  ;;  %v3178_v26 = vld [vmem:[%s4706_s9 + $0x38] sm:$0xff] }
0x102d   :  { %3733 = vmatpush3.bf16.msra.mxu0 %v3730_v41  ;;  %v3742_v27 = vpack.c.bf16 %v3178_v26, %v3177_v11  ;;  %v4598_v41 = vld [vmem:[%s4710_s13 + $0x4] sm:$0xf] }
0x102e   :  { %3528 = vmatprep.mubr.msk.f32.mxu1 %vm678_vm7, %v2092_v6  ;;  %3735 = vmatprep.subr.bf16.mxu0 %v3734_v48  ;;  %v2605_v43 = vrot.slane %v4598_v41, %v4195_v51  ;;  %v3184_v51 = vld [vmem:[%s4708_s11 + $0x48] sm:$0xff] }
0x102f   :  { %3529 = vmatmul.mubr.msk.f32.vlgmr.msra.gmra.mrb[24].mxu1 %vm678_vm7, %v2093_v30 }
0x1031   :  { %3737 = vmatpush3.bf16.msra.mxu0 %v3734_v48  ;;  %v2611_v48 = vrot.slane %v4598_v41, %v4201_v53  ;;  %v3185_v53 = vld [vmem:[%s4708_s11 + $0x50] sm:$0xff] }
0x10f5   :  { %v3509_v50 = vpop.f32.mrb[20].mxu1 }
0x10f6   :  { %v2172_v54 = vpop.f32.mrb[21].mxu1 }
0x10fa   :  { %v3516_v55 = vpop.f32.mrb[22].mxu1 }
0x10fb   :  { %2446 = vrot.lane.b32.xlu0 %v3516_v55, %s4728_s21  ;;  %v2259_v19 = vpop.f32.mrb[23].mxu1 }
0x10fc   :  { %2444 = vrot.lane.b32.xlu1 %v2259_v19, %s4728_s21 }
0x10ff   :  { %v3523_v20 = vpop.f32.mrb[16].mxu0 }
0x1100   :  { %v2346_v63 = vpop.f32.mrb[17].mxu0  ;;  %2454 = vrot.lane.b32.xlu0 %v3523_v20, %s4729_s22 }
0x1101   :  { %2452 = vrot.lane.b32.xlu1 %v2346_v63, %s4729_s22 }
0x1102   :  { %v3530_v61 = vpop.f32.mrb[24].mxu1 }
0x1103   :  { %v2433_v56 = vpop.f32.mrb[25].mxu1 }
0x1104   :  { %2462 = vrot.lane.b32.xlu0 %v3530_v61, %s4730_s24  ;;  %v3183_v61 = vld [vmem:[%s4708_s11 + $0x40] sm:$0xff] }
0x1105   :  { %2460 = vrot.lane.b32.xlu1 %v2433_v56, %s4730_s24  ;;  %v3746_v56 = vpack.c.bf16 %v3184_v51, %v3183_v61 }
0x1107   :  { %3747 = vmatprep.subr.bf16.mxu0 %v3746_v56 }
0x1109   :  { %2488 = vrot.lane.b32.xlu1 %v4471_v45, %s4727_s8 }
0x116d   :  { %v2447_v57 = vpop.permute.xlu0 %2446 }
0x116e   :  { %v2445_v58 = vpop.permute.xlu1 %2444  ;;  %v2467_v33 = vsel %vm305_vm5, %v3509_v50, %v2447_v57  ;;  %v3186_v57 = vld [vmem:[%s4708_s11 + $0x58] sm:$0xff] }
0x116f   :  { %v2466_v62 = vsel %vm305_vm5, %v2172_v54, %v2445_v58  ;;  %v3750_v58 = vpack.c.bf16 %v3186_v57, %v3185_v53 }
0x1172   :  { %v2455_v36 = vpop.permute.xlu0 %2454 }
0x1173   :  { %v2453_v59 = vpop.permute.xlu1 %2452  ;;  %v2469_v5 = vsel %vm678_vm7, %v2467_v33, %v2455_v36  ;;  %v3187_v36 = vld [vmem:[%s4708_s11 + $0x60] sm:$0xff]  ;;  %v3190_v33 = vld [vmem:[%s4708_s11 + $0x78] sm:$0xff] }
0x1174   :  { %v2468_v60 = vsel %vm678_vm7, %v2466_v62, %v2453_v59  ;;  %v3188_v59 = vld [vmem:[%s4708_s11 + $0x68] sm:$0xff] }
0x1175   :  { %v3754_v62 = vpack.c.bf16 %v3188_v59, %v3187_v36  ;;  %v2855_v36 = vrot.slane %v4598_v41, %v1524_v28 }
0x1176   :  { %v2463_v4 = vpop.permute.xlu0 %2462 }
0x1177   :  { %v2461_v47 = vpop.permute.xlu1 %2460  ;;  %v2471_v8 = vsel %vm1143_vm8, %v2469_v5, %v2463_v4  ;;  %v3189_v4 = vld [vmem:[%s4708_s11 + $0x70] sm:$0xff] }
0x1178   :  { %v2470_v7 = vsel %vm1143_vm8, %v2468_v60, %v2461_v47  ;;  %v3758_v60 = vpack.c.bf16 %v3190_v33, %v3189_v4  ;;  %v3180_v47 = vld [vmem:[%s4707_s10 + $0x1] ss:$0 sm:$0xff] }
0x1179   :  { %3539 = vmatprep.mubr.msk.f32.mxu0 %vm165_vm4, %v2470_v7 }
0x117a   :  { %3540 = vmatmul.mubr.msk.f32.vlgmr.msra.gmra.mrb[18].mxu0 %vm165_vm4, %v2471_v8 }
0x117b   :  { %v2489_v45 = vpop.permute.xlu1 %2488  ;;  %3749 = vmatpush3.bf16.msra.mxu0 %v3746_v56 }
0x117c   :  { %3751 = vmatprep.subr.bf16.mxu0 %v3750_v58 }
0x117f   :  { %3753 = vmatpush3.bf16.msra.mxu0 %v3750_v58 }
0x1180   :  { %3755 = vmatprep.subr.bf16.mxu0 %v3754_v62 }
0x1183   :  { %3757 = vmatpush3.bf16.msra.mxu0 %v3754_v62 }
0x1184   :  { %3759 = vmatprep.subr.bf16.mxu0 %v3758_v60 }
0x1187   :  { %3761 = vmatpush3.bf16.msra.mxu0 %v3758_v60  ;;  %v2861_v60 = vrot.slane %v4598_v41, %v1530_v0 }
0x124d   :  { %v3541_v52 = vpop.f32.mrb[18].mxu0 }
0x124e   :  { %v2569_v9 = vadd.f32 %v3541_v52, %v2489_v45  ;;  %v2563_v10 = vpop.f32.mrb[19].mxu0 }
0x124f   :  { %v2564_v40 = vadd.f32 %v2563_v10, %v2489_v45 }
0x1250   :  { %v2575_v1 = vadd.f32 %v2569_v9, %v4462_v29 }
0x1251   :  { %v2574_v12 = vadd.f32 %v2564_v40, %v4460_v44  ;;  %v3175_v44 = vld [vmem:[%s4706_s9 + $0x20] sm:$0xff] }
0x1252   :  { %v2579_v39 = vsel %vm165_vm4, %v2575_v1, 0.0  ;;  %v3738_v25 = vpack.c.bf16 %v3176_v24, %v3175_v44  ;;  %v3192_v44 = vld [vmem:[%s4709_s12 + $0x1] ss:$0 sm:$0xff] }
0x1253   :  { %2580 = vadd.xlane.f32.xlu1 %v2579_v39  ;;  %v2576_v42 = vsel %vm165_vm4, %v2574_v12, 0.0 }
0x1254   :  { %2577 = vadd.xlane.f32.xlu0 %v2576_v42  ;;  %3739 = vmatprep.subr.bf16.mxu1 %v3738_v25 }
0x1255   :  { %3741 = vmatpush3.bf16.msra.mxu1 %v3738_v25 }
0x1256   :  { %3743 = vmatprep.subr.bf16.mxu1 %v3742_v27 }
0x1259   :  { %3745 = vmatpush3.bf16.msra.mxu1 %v3742_v27 }
0x12e0   :  { %v2581_v15 = vpop.xlane.xlu1 %2580 }
0x12e1   :  { %v2583_v37 = vmul.f32 0.03125, %v2581_v15  ;;  %v2578_v38 = vpop.xlane.xlu0 %2577 }
0x12e2   :  { %v2582_v18 = vmul.f32 0.03125, %v2578_v38 }
0x12e3   :  { %v2585_v17 = vsub.f32 %v2575_v1, %v2583_v37 }
0x12e4   :  { %v2584_v13 = vsub.f32 %v2574_v12, %v2582_v18 }
0x12e5   :  { %v2587_v23 = vmul.f32 %v2585_v17, %v2585_v17 }
0x12e6   :  { %v2586_v21 = vmul.f32 %v2584_v13, %v2584_v13 }
0x12e7   :  { %v2591_v29 = vsel %vm165_vm4, %v2587_v23, 0.0 }
0x12e8   :  { %v2588_v22 = vsel %vm165_vm4, %v2586_v21, 0.0 }
0x12e9   :  { %2589 = vadd.xlane.f32.xlu0 %v2588_v22 }
0x12ed   :  { %2592 = vadd.xlane.f32.xlu0 %v2591_v29 }
0x1376   :  { %v2590_v30 = vpop.xlane.xlu0 %2589 }
0x1377   :  { %v2594_v6 = vmul.f32 0.03125, %v2590_v30 }
0x1379   :  { %v2596_v31 = vadd.f32 1e-12, %v2594_v6 }
0x137a   :  { %v2593_v32 = vpop.xlane.xlu0 %2592 }
0x137b   :  { %3976 = vrsqrt.f32 %v2596_v31  ;;  %v2595_v34 = vmul.f32 0.03125, %v2593_v32  ;;  %v4035_v32 = vmov 1  }
0x137c   :  { %3894 = vset.pattern.permute.xlu0 %v4035_v32 }
0x137d   :  { %v2597_v35 = vadd.f32 1e-12, %v2595_v34 }
0x137f   :  { %3978 = vrsqrt.f32 %v2597_v35 }
0x1385   :  { %v3977_v46 = vpop.eup %3976 }
0x1386   :  { %v2600_v3 = vmul.f32 %v3977_v46, %v2584_v13 }
0x1388   :  { %v2606_v50 = vmul.f32 %v2605_v43, %v2600_v3 }
0x1389   :  { %v3979_v54 = vpop.eup %3978 }
0x138a   :  { %v2601_v55 = vmul.f32 %v3979_v54, %v2585_v17  ;;  %v2612_v19 = vadd.f32 %v2611_v48, %v2606_v50 }
0x138c   :  { %v2607_v20 = vmul.f32 %v2605_v43, %v2601_v55  ;;  %3550 = vmatprep.mubr.msk.f32.mxu1 %vm165_vm4, %v2612_v19 }
0x138e   :  { %v2613_v63 = vadd.f32 %v2611_v48, %v2607_v20  ;;  %v2864_v20 = vld [vmem:[%s4699_s2] sm:$0xff] }
0x1390   :  { %3551 = vmatmul.mubr.msk.f32.vlgmr.msra.gmra.mrb[26].mxu1 %vm165_vm4, %v2613_v63 }
0x1391   :  { %3576 = vmatprep.mubr.msk.f32.mxu1 %vm4037_vm10, %v4019_v16 }
0x1463   :  { %v3552_v5 = vpop.f32.mrb[26].mxu1 }
0x1464   :  { %v2705_v7 = vadd.f32 %v3552_v5, %v3180_v47  ;;  %v2699_v8 = vpop.f32.mrb[27].mxu1 }
0x1465   :  { %v2700_v45 = vadd.f32 %v3180_v47, %v2699_v8 }
0x1466   :  { %v2709_v52 = vmul.f32 %v2705_v7, %v2705_v7 }
0x1467   :  { %v2708_v9 = vmul.f32 %v2700_v45, %v2700_v45 }
0x1468   :  { %v2711_v10 = vmul.f32 %v2709_v52, %v2705_v7 }
0x1469   :  { %v2710_v40 = vmul.f32 %v2708_v9, %v2700_v45  ;;  %v2951_v9 = vld [vmem:[%s4711_s14] sm:$0xff] }
0x146a   :  { %v2713_v1 = vmul.f32 0.044715, %v2711_v10  ;;  %v3766_v10 = vpack.c.bf16 %v2952_v49, %v2951_v9 }
0x146b   :  { %v2712_v12 = vmul.f32 0.044715, %v2710_v40  ;;  %v2953_v40 = vld [vmem:[%s4711_s14 + $0x10] sm:$0xff] }
0x146c   :  { %v2715_v39 = vadd.f32 %v2713_v1, %v2705_v7  ;;  %v2954_v1 = vld [vmem:[%s4711_s14 + $0x18] sm:$0xff] }
0x146d   :  { %v2714_v42 = vadd.f32 %v2712_v12, %v2700_v45  ;;  %v3769_v12 = vpack.c.bf16 %v2954_v1, %v2953_v40 }
0x146e   :  { %v2717_v15 = vmul.f32 0.7978846, %v2715_v39  ;;  %v3035_v39 = vld [vmem:[%s4700_s3] sm:$0xff]  ;;  %s4038_s3 = smov [#allocation2]  }
0x146f   :  { %v2716_v37 = vmul.f32 0.7978846, %v2714_v42  ;;  %vm3039_vm13 = vcmp.eq.s32.totalorder %v3035_v39, 4294967295  ;;  %vm3036_vm0 = vcmp.ne.s32.totalorder %v3035_v39, 4294967295 }
0x1470   :  { %3980 = vtanh.f32 %v2717_v15  ;;  %v3040_v42 = vsel %vm3039_vm13, 0, %v3035_v39 }
0x1471   :  { %3982 = vtanh.f32 %v2716_v37 }
0x147a   :  { %v3981_v38 = vpop.eup %3980 }
0x147b   :  { %v3983_v18 = vpop.eup %3982  ;;  %v2721_v17 = vadd.f32 1.0, %v3981_v38 }
0x147c   :  { %v2720_v13 = vadd.f32 1.0, %v3983_v18  ;;  %v3198_v18 = vld [vmem:[%s4712_s15] ss:$0 sm:$0xff]  ;;  %s3092_s15 = sshll.u32 %s4038_s3, 4  ;;  %s3093_s15 = int_to_ptr.vmem [resolvable:$true] %s3092_s15 }
0x147d   :  { %v2723_v21 = vmul.f32 0.5, %v2721_v17  ;;  %s3994_s27 = scalar_lea.vmem %s3093_s15, 16  ;;  %s3998_s7 = scalar_lea.vmem %s3093_s15, 32 }
0x147e   :  { %v2722_v22 = vmul.f32 0.5, %v2720_v13  ;;  %p3995_p0 = scmp.ne.s32.totalorder %s3093_s15, %s3994_s27  ;;  %p3999_p1 = scmp.lt.s32.totalorder %s3093_s15, %s3093_s15 }
0x147f   :  { %v2725_v29 = vmul.f32 %v2723_v21, %v2705_v7  ;;  %p4000_p2 = scmp.lt.s32.totalorder %s3998_s7, %s3994_s27 }
0x1480   :  { %v2724_v23 = vmul.f32 %v2722_v22, %v2700_v45 }
0x1481   :  { %p4001_p3 = por %p4000_p2, %p3999_p1 }
0x1482   :  { %3569 = vmatprep.mubr.msk.f32.mxu0 %vm1412_vm9, %v2724_v23 }
0x1483   :  { %3570 = vmatmul.mubr.msk.f32.vlgmr.msra.gmra.mrb[20].mxu0 %vm1412_vm9, %v2725_v29  ;;  %p4002_p4 = pnand %p4001_p3, %p3995_p0 }
0x1556   :  { %v3571_v24 = vpop.f32.mrb[20].mxu0 }
0x1557   :  { %v2821_v25 = vadd.f32 %v3571_v24, %v3192_v44  ;;  %v2815_v11 = vpop.f32.mrb[21].mxu0 }
0x1558   :  { %v2816_v26 = vadd.f32 %v3192_v44, %v2815_v11 }
0x1559   :  { %v2825_v27 = vadd.f32 %v2821_v25, %v2613_v63  ;;  %v4036_v63 = vmov 0.0|0.0  }
0x155a   :  { %v2824_v30 = vadd.f32 %v2816_v26, %v2612_v19  ;;  %3762 = vmatprep.subr.bf16.mxu1 %v4036_v63 }
0x155b   :  { %v2829_v6 = vsel %vm165_vm4, %v2825_v27, 0.0 }
0x155c   :  { %2830 = vadd.xlane.f32.xlu0 %v2829_v6  ;;  %v2826_v31 = vsel %vm165_vm4, %v2824_v30, 0.0 }
0x155d   :  { %2827 = vadd.xlane.f32.xlu1 %v2826_v31 }
0x15e9   :  { %v2831_v34 = vpop.xlane.xlu0 %2830 }
0x15ea   :  { %v2833_v35 = vmul.f32 0.03125, %v2831_v34  ;;  %v2828_v43 = vpop.xlane.xlu1 %2827 }
0x15eb   :  { %v2832_v46 = vmul.f32 0.03125, %v2828_v43 }
0x15ec   :  { %v2835_v3 = vsub.f32 %v2825_v27, %v2833_v35  ;;  %v3200_v27 = vsel %vm3036_vm0, 1.0, %v4019_v16 }
0x15ed   :  { %v2834_v48 = vsub.f32 %v2824_v30, %v2832_v46  ;;  %v3074_v30 = vsel %vm3066_vm1, %v3200_v27, 0.0 }
0x15ee   :  { %v2837_v50 = vmul.f32 %v2835_v3, %v2835_v3  ;;  %v3075_v6 = vrot.slane %v3074_v30, 4 }
0x15ef   :  { %v2836_v54 = vmul.f32 %v2834_v48, %v2834_v48 }
0x15f0   :  { %v2841_v55 = vsel %vm165_vm4, %v2837_v50, 0.0  ;;  %v3076_v31 = vadd.f32 %v3075_v6, %v3074_v30 }
0x15f1   :  { %2842 = vadd.xlane.f32.xlu0 %v2841_v55  ;;  %v2838_v19 = vsel %vm165_vm4, %v2836_v54, 0.0 }
0x15f2   :  { %2839 = vadd.xlane.f32.xlu1 %v2838_v19  ;;  %v3077_v32 = vrot.slane %v3076_v31, 2 }
0x15f4   :  { %v3078_v35 = vadd.f32 %v3077_v32, %v3076_v31 }
0x15f6   :  { %v3079_v43 = vrot.slane %v3078_v35, 1 }
0x1603   :  { %2866 = vperm.xlu1 %3893, %v2864_v20  }
0x1607   :  { %2872 = vperm.xlu0 %3894, %v2864_v20  }
0x160b   :  { %3895 = vset.pattern.permute.xlu0 %v4018_v2 }
0x160c   :  { %3042 = vperm.xlu0 %3895, %v3040_v42  }
0x167e   :  { %v2843_v61 = vpop.xlane.xlu0 %2842 }
0x167f   :  { %v2845_v51 = vmul.f32 0.03125, %v2843_v61  ;;  %v2840_v56 = vpop.xlane.xlu1 %2839 }
0x1680   :  { %v2844_v53 = vmul.f32 0.03125, %v2840_v56 }
0x1681   :  { %v2847_v57 = vadd.f32 1e-12, %v2845_v51 }
0x1682   :  { %v2846_v58 = vadd.f32 1e-12, %v2844_v53 }
0x1683   :  { %3984 = vrsqrt.f32 %v2847_v57  ;;  %v2867_v62 = vpop.permute.xlu1 %2866 }
0x1684   :  { %3986 = vrsqrt.f32 %v2846_v58  ;;  %vm2868_vm12 = vcmp.eq.s32.totalorder %v4153_v14, %v2867_v62 }
0x1685   :  { %v3195_v28 = vsel %vm2868_vm12, 1.0, %v4019_v16 }
0x1686   :  { %v2873_v2 = vpop.permute.xlu0 %2872 }
0x1687   :  { %vm2874_vm11 = vcmp.eq.s32.totalorder %v4153_v14, %v2873_v2 }
0x1688   :  { %v3196_v45 = vsel %vm2874_vm11, 1.0, %v4019_v16 }
0x1689   :  { %v2877_v41 = vadd.f32 %v3196_v45, %v3195_v28 }
0x168b   :  { %v3043_v38 = vpop.permute.xlu0 %3042 }
0x168c   :  { %vm3044_vm14 = vcmp.eq.s32.totalorder %v4153_v14, %v3043_v38 }
0x168d   :  { %v3985_v59 = vpop.eup %3984  ;;  %v3201_v13 = vsel %vm3044_vm14, 1.0, %v4019_v16 }
0x168e   :  { %v3987_v4 = vpop.eup %3986  ;;  %v2851_v33 = vmul.f32 %v3985_v59, %v2835_v3  ;;  %v3080_v3 = vadd.f32 %v3079_v43, %v3078_v35 }
0x168f   :  { %v2850_v47 = vmul.f32 %v3987_v4, %v2834_v48 }
0x1690   :  { %v2857_v5 = vmul.f32 %v2855_v36, %v2851_v33  ;;  %v3081_v55 = vmax.f32 %v3080_v3, 1.0 }
0x1691   :  { %v2856_v7 = vmul.f32 %v2855_v36, %v2850_v47 }
0x1692   :  { %v2863_v8 = vadd.f32 %v2861_v60, %v2857_v5 }
0x1693   :  { %v2862_v52 = vadd.f32 %v2861_v60, %v2856_v7 }
0x1695   :  { %v3763_v0 = vpack.c.bf16 %v2863_v8, %v2862_v52 }
0x1697   :  { %3764 = vmatpush3.bf16.msra.mxu1 %v3763_v0 }
0x1698   :  { %3765 = vmatprep.subr.bf16.mxu1 %v4036_v63 }
0x169a   :  { %3577 = vmatmul.mubr.msk.f32.vlgmr.msra.gmra.mrb[28].mxu1 %vm678_vm7, %v2877_v41 }
0x169b   :  { %3767 = vmatpush3.bf16.msra.mxu1 %v3766_v10  ;;  %3587 = vmatprep.mubr.msk.f32.mxu1 %vm4037_vm10, %v4019_v16 }
0x169c   :  { %3768 = vmatprep.subr.bf16.mxu1 %v4036_v63 }
0x169f   :  { %3770 = vmatpush3.bf16.msra.mxu1 %v3769_v12 }
0x176d   :  { %v2947_v15 = vpop.f32.mrb[28].mxu1 }
0x176e   :  { %v3578_v37 = vpop.f32.mrb[29].mxu1  ;;  %3588 = vmatmul.mubr.msk.f32.vlgmr.msra.gmra.mrb[30].mxu1 %vm165_vm4, %v2947_v15 }
0x1841   :  { %v3031_v17 = vpop.f32.mrb[30].mxu1 }
0x1842   :  { %v3032_v21 = vadd.f32 %v3198_v18, %v3031_v17  ;;  %v3589_v22 = vpop.f32.mrb[31].mxu1 }
0x1844   :  { %v3060_v23 = vmul.f32 %v3201_v13, %v3032_v21  ;;  %v3048_v29 = vsel %vm3047_vm15, %v3032_v21, -inf }
0x1845   :  { %3049 = vmax.xlane.f32.xlu1 %v3048_v29 }
0x1846   :  { %v3061_v44 = vsel %vm3047_vm15, %v3060_v23, 0.0 }
0x1847   :  { %3062 = vadd.xlane.f32.xlu0 %v3061_v44 }
0x18d2   :  { %v3050_v24 = vpop.xlane.xlu1 %3049 }
0x18d3   :  { %v3051_v25 = vsub.f32 %v3032_v21, %v3050_v24 }
0x18d4   :  { %v3063_v54 = vpop.xlane.xlu0 %3062 }
0x18d5   :  { %v3052_v11 = vmul.f32 1.442695, %v3051_v25 }
0x18d7   :  { %3988 = vpow2.f32 %v3052_v11 }
0x18e1   :  { %v3989_v14 = vpop.eup %3988 }
0x18e2   :  { %v3054_v26 = vsel %vm3047_vm15, %v3989_v14, 0.0 }
0x18e3   :  { %3055 = vadd.xlane.f32.xlu1 %v3054_v26 }
0x1970   :  { %v3056_v34 = vpop.xlane.xlu1 %3055 }
0x1971   :  { %3990 = vlog2.f32 %v3056_v34 }
0x1972   :  { %3992 = vrcp.f32 %v3081_v55 }
0x197b   :  { %v3991_v46 = vpop.eup %3990 }
0x197c   :  { %v3058_v48 = vmul.f32 0.6931472, %v3991_v46  ;;  %v3993_v57 = vpop.eup %3992 }
0x197e   :  { %v3059_v50 = vadd.f32 %v3058_v48, %v3050_v24 }
0x1980   :  { %v3064_v19 = vsub.f32 %v3059_v50, %v3063_v54 }
0x1982   :  { %v3065_v20 = vmul.f32 %v3200_v27, %v3064_v19 }
0x1984   :  { %v3067_v16 = vsel %vm3066_vm1, %v3065_v20, 0.0 }
0x1985   :  { %v3068_v63 = vrot.slane %v3067_v16, 4 }
0x1987   :  { %v3069_v61 = vadd.f32 %v3068_v63, %v3067_v16 }
0x1989   :  { %v3070_v51 = vrot.slane %v3069_v61, 2 }
0x198b   :  { %v3071_v56 = vadd.f32 %v3070_v51, %v3069_v61 }
0x198d   :  { %v3072_v53 = vrot.slane %v3071_v56, 1 }
0x198f   :  { %v3073_v58 = vadd.f32 %v3072_v53, %v3071_v56 }
0x1991   :  { %v3083_v36 = vmul.f32 %v3993_v57, %v3073_v58 }
0x1993   :  { %3085 = vst.msk [vmem:[#allocation2] sm:$0x1] %vm3084_vm2, %v3083_v36 }
0x1994   :  { %4005 = shalt.err (!%p4002_p4)
}
0x1995   :  { %s4006_s21 = scalar_lea.hbm %s4713_s16, 16 }
0x1996   :  { %p4007_p5 = scmp.ne.s32.totalorder %s4713_s16, %s4006_s21  ;;  %p4010_p6 = scmp.lt.u32.totalorder %s4006_s21, %s4713_s16 }
0x1998   :  { %p4012_p7 = pnand %p4010_p6, %p4007_p5 }
0x199a   :  { %4015 = shalt.err (!%p4012_p7)
}
0x199b   :  { %3095 = dma.vmem_to_hbm [thread:$0]  %s3093_s15, 16, %s4713_s16, [#allocation3]  }
0x199c   :  { %4016 = dma.done.wait [#allocation3], 16  }
0x199d   :  { %4017 = vsyncadd [#allocation3], 4294967280 }
0x199e   :  { %3099 = vsyncpa [#allocation3], 1 }

</bundles_post_ra>
